<compile_context>
chip_gen: v7x
topology: tpu7x:2x2x1
jax: 0.10.0
libtpu: 0.0.40
codegen_flags: <defaults>
</compile_context>

<pallas_src>
import math
import jax
import jax.numpy as jnp
from jax.experimental import pallas as pl
from jax.experimental.pallas import tpu as pltpu

HID = 32
HEADS = 4
DHEAD = HID // HEADS
TIMES = 2
EPS = 1e-5                      # nn.LayerNorm default
SCALE = 1.0 / math.sqrt(DHEAD)
NEG = -100000.0                 # masked_fill value used by the PyTorch module

# parameter slab layout (PSLAB: (96, 256) f32)
#   rows  0:32, cols   0: 96 -> Wq|Wk|Wv
#   rows  0:32, cols  96:128 -> Wo
#   rows  0:32, cols 128:192 -> W1
#   rows  0: 4, cols 192:224 -> mexp  (head -> head-block broadcast)
#   rows  0:32, cols 224:228 -> mblk  (per-head block sum, SCALE folded in)
#   rows 32:96, cols   0: 32 -> W2
#   rows 32:64, cols 128:224 -> xpand (block-diag edge head-tiling expander)


def _layer_norm(x, gamma, beta):
    mean = jnp.mean(x, axis=-1, keepdims=True)
    var = jnp.mean((x - mean) ** 2, axis=-1, keepdims=True)
    return (x - mean) * jax.lax.rsqrt(var + EPS) * gamma + beta


def transformer_layer_kernel(x_ref, esb_ref, pslab_ref, vslab_ref, o_ref):
    f32 = jnp.float32
    bb, S, _ = x_ref.shape
    n = bb * S

    # ---- biases / LayerNorm params: one padded (8,128) tile ----
    vec = vslab_ref[...]
    b_qkv = vec[0:1, 0:3 * HID]
    b_o = vec[1:2, 0:HID]
    b_1 = vec[2:3, 0:TIMES * HID]
    b_2 = vec[3:4, 0:HID]
    g1, be1 = vec[4:5, 0:HID], vec[5:6, 0:HID]
    g2, be2 = vec[6:7, 0:HID], vec[7:8, 0:HID]

    # ---- fused Q|K|V projection (single matmul) ----
    x2d = x_ref[...].reshape(n, HID)
    qkv = jnp.dot(x2d, pslab_ref[0:HID, 0:3 * HID],
                  preferred_element_type=f32) + b_qkv
    q4 = qkv[:, 0:HID].reshape(bb, S, 1, HID)          # broadcasts over k
    k4 = qkv[:, HID:2 * HID].reshape(bb, 1, S, HID)    # broadcasts over q
    v4 = qkv[:, 2 * HID:3 * HID].reshape(bb, 1, S, HID)

    # ---- single fused edge head-tiling matmul ----
    # esb lanes: [ek(8) | eq_swapped(8) | ev(8) | mask_bias(x4) | 0(x4)]
    # xpand rows 24:32 are zero, so the bias / pad lanes do not leak in.
    esb = esb_ref[...]                                 # (bb, S, S, 32)
    e3 = jnp.dot(esb.reshape(n * S, HID), pslab_ref[HID:2 * HID, 128:224],
                 preferred_element_type=f32).reshape(bb, S, S, 3 * HID)
    ekt = e3[..., 0:HID]
    eqt = e3[..., HID:2 * HID]
    bias4 = esb[..., 3 * DHEAD:3 * DHEAD + HEADS]      # additive mask bias (b,q,k,h)

    # ---- all-head scores via the algebraic factorization ----
    # scores[b,q,k,h] = SCALE * sum_{d in head h} (q+eq^T)(k+ek)  (+ mask bias)
    p = (q4 + eqt) * (k4 + ekt)                        # (bb, S, S, HID)
    scores = jnp.dot(p.reshape(n * S, HID), pslab_ref[0:HID, 224:228],
                     preferred_element_type=f32).reshape(bb, S, S, HEADS) + bias4

    # softmax over k (axis=2); exact divide to match the reference closely
    m = jnp.max(scores, axis=2, keepdims=True)
    e = jnp.exp(scores - m)
    attn = e / jnp.sum(e, axis=2, keepdims=True)       # (bb, S, S, HEADS)

    # ---- context: broadcast attn back over head blocks, fold edge_value in ----
    attn_t = jnp.dot(attn.reshape(n * S, HEADS), pslab_ref[0:HEADS, 192:224],
                     preferred_element_type=f32).reshape(bb, S, S, HID)
    cv = v4 + e3[..., 2 * HID:3 * HID]                 # evt consumed late (live range)
    ctx = jnp.sum(attn_t * cv, axis=2).reshape(n, HID)

    attn_out = jnp.dot(ctx, pslab_ref[0:HID, 96:128],
                       preferred_element_type=f32) + b_o
    h1 = _layer_norm(x2d + attn_out, g1, be1)          # dropout identity (eval / p=0)

    ff = jnp.dot(h1, pslab_ref[0:HID, 128:192], preferred_element_type=f32) + b_1
    ff = jnp.maximum(ff, 0.0)                          # ReLU
    ff = jnp.dot(ff, pslab_ref[HID:HID + TIMES * HID, 0:HID],
                 preferred_element_type=f32) + b_2
    out = _layer_norm(h1 + ff, g2, be2)

    o_ref[...] = out.reshape(bb, S, HID).astype(o_ref.dtype)


def _selector_constants():
    h_of = jnp.arange(HID) // DHEAD
    mblk = jnp.where(h_of[:, None] == jnp.arange(HEADS)[None, :],
                     SCALE, 0.0).astype(jnp.float32)                  # (HID, HEADS)
    mexp = (jnp.arange(HEADS)[:, None] == h_of[None, :]).astype(jnp.float32)  # (HEADS, HID)
    tile = (jnp.arange(DHEAD)[:, None] ==
            (jnp.arange(HID)[None, :] % DHEAD)).astype(jnp.float32)   # (DHEAD, HID)
    xpand = jnp.zeros((HID, 3 * HID), jnp.float32)
    xpand = xpand.at[0:DHEAD, 0:HID].set(tile)                        # ek -> ekt
    xpand = xpand.at[DHEAD:2 * DHEAD, HID:2 * HID].set(tile)          # eq -> eqt
    xpand = xpand.at[2 * DHEAD:3 * DHEAD, 2 * HID:3 * HID].set(tile)  # ev -> evt
    return mblk, mexp, xpand


def _pack_params(params):
    (wq, bq, wk, bk, wv, bv, wo, bo, g1, be1, w1, b1, w2, b2, g2, be2) = params
    mblk, mexp, xpand = _selector_constants()

    pslab = jnp.zeros((96, 256), jnp.float32)
    pslab = pslab.at[0:HID, 0:3 * HID].set(jnp.concatenate([wq, wk, wv], axis=1))
    pslab = pslab.at[0:HID, 96:128].set(wo)
    pslab = pslab.at[0:HID, 128:192].set(w1)
    pslab = pslab.at[0:HEADS, 192:224].set(mexp)
    pslab = pslab.at[0:HID, 224:228].set(mblk)
    pslab = pslab.at[HID:HID + TIMES * HID, 0:HID].set(w2)
    pslab = pslab.at[HID:2 * HID, 128:224].set(xpand)

    vslab = jnp.zeros((8, 128), jnp.float32)
    vslab = vslab.at[0, 0:3 * HID].set(jnp.concatenate([bq, bk, bv], axis=1)[0])
    vslab = vslab.at[1, 0:HID].set(bo[0])
    vslab = vslab.at[2, 0:TIMES * HID].set(b1[0])
    vslab = vslab.at[3, 0:HID].set(b2[0])
    vslab = vslab.at[4, 0:HID].set(g1[0])
    vslab = vslab.at[5, 0:HID].set(be1[0])
    vslab = vslab.at[6, 0:HID].set(g2[0])
    vslab = vslab.at[7, 0:HID].set(be2[0])
    return pslab, vslab


def _largest_divisor_leq(n, cap):
    cap = int(max(1, min(n, cap)))
    for d in range(cap, 0, -1):
        if n % d == 0:
            return d
    return 1


def _pick_batch_block(B, S):
    try:
        kind = jax.devices()[0].device_kind.lower()
    except Exception:
        kind = ""
    # rough padded-(8,128)-tile VMEM footprint per batch row (live 4-D
    # intermediates + double-buffered edge slab), used to cap bb per arch.
    per_row = 12 * S * 8 * 128 * 4
    if "v7" in kind or "7x" in kind:
        # 2 TensorCores / 64 MiB physical VMEM: one fused step per core.
        budget, target = 20 << 20, max(1, B // 2)
    elif "v5" in kind:
        # smallest scoped-VMEM default: tighter cap, keep >=2 steps once B grows.
        budget, target = 10 << 20, (B if B <= 4 else max(1, B // 2))
    else:  # v6e and default
        budget, target = 20 << 20, (B if B <= 4 else max(1, B // 2))
    cap = max(1, min(target, budget // per_row))
    return _largest_divisor_leq(B, cap), per_row


def transformer_layer(x, graph, edge_key, edge_value, edge_query, params,
                      batch_block=None):
    B, S, _ = x.shape
    bb, per_row = _pick_batch_block(B, S)
    if batch_block is not None:
        bb = batch_block
    assert B % bb == 0

    pslab, vslab = _pack_params(params)

    # host-side layout plumbing (transpose / stack / replicate, no arithmetic):
    # one 32-lane slab holding the three edge tensors + the additive mask bias.
    eq_sw = jnp.swapaxes(edge_query, 1, 2)                       # 'bkqd' -> 'bqkd'
    bias = (graph.astype(jnp.float32) - 1.0) * (-NEG)            # 0 keep / -1e5 masked
    bias4 = jnp.broadcast_to(bias[..., None], (B, S, S, HEADS))
    pad = jnp.zeros((B, S, S, HID - 3 * DHEAD - HEADS), jnp.float32)
    esb = jnp.concatenate([edge_key, eq_sw, edge_value, bias4, pad], axis=-1)

    step_bytes = per_row * bb + (2 << 20)
    vmem_limit = int(min(32 << 20, max(16 << 20, 2 * step_bytes)))

    grid = (B // bb,)
    out = pl.pallas_call(
        transformer_layer_kernel,
        out_shape=jax.ShapeDtypeStruct((B, S, HID), jnp.float32),
        grid=grid,
        in_specs=[
            pl.BlockSpec((bb, S, HID), lambda b: (b, 0, 0)),          # x
            pl.BlockSpec((bb, S, S, HID), lambda b: (b, 0, 0, 0)),    # edge+bias slab
            pl.BlockSpec((96, 256), lambda b: (0, 0)),                # parameter slab
            pl.BlockSpec((8, 128), lambda b: (0, 0)),                 # bias / LN slab
        ],
        out_specs=pl.BlockSpec((bb, S, HID), lambda b: (b, 0, 0)),
        compiler_params=pltpu.CompilerParams(
            dimension_semantics=("parallel",),
            vmem_limit_bytes=vmem_limit),
    )(x, esb, pslab, vslab)
    return out


def reference(x, graph, ek, ev, eq, params):
    (wq, bq, wk, bk, wv, bv, wo, bo, g1, be1, w1, b1, w2, b2, g2, be2) = params
    B, S, _ = x.shape
    q = (x @ wq + bq).reshape(B, S, HEADS, DHEAD)
    k = (x @ wk + bk).reshape(B, S, HEADS, DHEAD)
    v = (x @ wv + bv).reshape(B, S, HEADS, DHEAD)
    scores = (jnp.einsum('bqhd,bkhd->bhqk', q, k)
              + jnp.einsum('bqhd,bqkd->bhqk', q, ek)
              + jnp.einsum('bkqd,bkhd->bhqk', eq, k)
              + jnp.einsum('bkqd,bqkd->bqk', eq, ek)[:, None])
    scores = scores * SCALE
    scores = jnp.where(graph[:, None] == 0.0, NEG, scores)
    attn = jax.nn.softmax(scores, axis=-1)
    ctx = (jnp.einsum('bhqk,bkhd->bqhd', attn, v)
           + jnp.einsum('bhqk,bqkd->bqhd', attn, ev)).reshape(B, S, HID)
    attn_out = ctx @ wo + bo
    h1 = _layer_norm(x + attn_out, g1, be1)
    ff = jnp.maximum(h1 @ w1 + b1, 0.0) @ w2 + b2
    return _layer_norm(h1 + ff, g2, be2)


def init_params(key):
    ks = jax.random.split(key, 20)

    def lin(kw, kb, fan_in, fan_out):
        # PyTorch-style (out,in) weight, transposed to (in,out) for the kernel.
        w = jax.random.normal(kw, (fan_out, fan_in), jnp.float32) / math.sqrt(fan_in)
        b = 0.05 * jax.random.normal(kb, (1, fan_out), jnp.float32)
        return w.T, b

    wq, bq = lin(ks[0], ks[1], HID, HID)
    wk, bk = lin(ks[2], ks[3], HID, HID)
    wv, bv = lin(ks[4], ks[5], HID, HID)
    wo, bo = lin(ks[6], ks[7], HID, HID)
    w1, b1 = lin(ks[8], ks[9], HID, TIMES * HID)
    w2, b2 = lin(ks[10], ks[11], TIMES * HID, HID)
    g1 = 1.0 + 0.1 * jax.random.normal(ks[12], (1, HID), jnp.float32)
    be1 = 0.1 * jax.random.normal(ks[13], (1, HID), jnp.float32)
    g2 = 1.0 + 0.1 * jax.random.normal(ks[14], (1, HID), jnp.float32)
    be2 = 0.1 * jax.random.normal(ks[15], (1, HID), jnp.float32)
    return (wq, bq, wk, bk, wv, bv, wo, bo, g1, be1, w1, b1, w2, b2, g2, be2)


if __name__ == "__main__":
    B, S = 2, 8
    key = jax.random.PRNGKey(0)
    kx, kg, kek, kev, keq, kp = jax.random.split(key, 6)

    x = jax.random.normal(kx, (B, S, HID), jnp.float32)
    graph = (jax.random.uniform(kg, (B, S, S)) < 0.7)
    graph = (graph | jnp.eye(S, dtype=bool)[None]).astype(jnp.float32)
    edge_key = 0.1 * jax.random.normal(kek, (B, S, S, DHEAD), jnp.float32)
    edge_value = 0.1 * jax.random.normal(kev, (B, S, S, DHEAD), jnp.float32)
    edge_query = 0.1 * jax.random.normal(keq, (B, S, S, DHEAD), jnp.float32)
    params = init_params(kp)

    out = transformer_layer(x, graph, edge_key, edge_value, edge_query, params)
    out = jax.block_until_ready(out)

    ref = reference(x, graph, edge_key, edge_value, edge_query, params)
    assert out.shape == (B, S, HID)
    assert jnp.allclose(out, ref, atol=2e-3, rtol=2e-3), "mismatch vs JAX reference"

    # TODO(synk): pos projection, r_w_bias/r_r_bias, pairlinear and the kv_pair /
    # remove_mask / use_node branches exist in __init__ but are unused by
    # forward() for this config, so they are not materialized.
    print("KERNEL_OK")
</pallas_src>

<mosaic_0001>
module attributes {stable_mosaic.version = 11 : i64} {
  func.func @transformer_layer_kernel(%arg0: i32, %arg1: memref<2x8x32xf32, #tpu.memory_space<vmem>>, %arg2: memref<2x8x8x32xf32, #tpu.memory_space<vmem>>, %arg3: memref<96x256xf32, #tpu.memory_space<vmem>>, %arg4: memref<8x128xf32, #tpu.memory_space<vmem>>, %arg5: memref<2x8x32xf32, #tpu.memory_space<vmem>>) attributes {dimension_semantics = [#tpu.dimension_semantics<parallel>], iteration_bounds = array<i64: 1>, scalar_prefetch = 0 : i64, scratch_operands = 0 : i64, tpu.core_type = #tpu.core_type<tc>, window_params = [{transform_indices = @transform_0, window_bounds = array<i64: 2, 8, 32>}, {transform_indices = @transform_1, window_bounds = array<i64: 2, 8, 8, 32>}, {pipeline_mode = #tpu.pipeline_mode<synchronous>, transform_indices = @transform_2, window_bounds = array<i64: 96, 256>}, {pipeline_mode = #tpu.pipeline_mode<synchronous>, transform_indices = @transform_3, window_bounds = array<i64: 8, 128>}, {transform_indices = @transform_4, window_bounds = array<i64: 2, 8, 32>}]} {
    %c0 = arith.constant 0 : index
    %c0_0 = arith.constant 0 : index
    %0 = vector.load %arg4[%c0, %c0_0] : memref<8x128xf32, #tpu.memory_space<vmem>>, vector<8x128xf32>
    %1 = vector.extract_strided_slice %0 {offsets = [0, 0], sizes = [1, 96], strides = [1, 1]} : vector<8x128xf32> to vector<1x96xf32>
    %2 = vector.extract_strided_slice %0 {offsets = [1, 0], sizes = [1, 32], strides = [1, 1]} : vector<8x128xf32> to vector<1x32xf32>
    %3 = vector.extract_strided_slice %0 {offsets = [2, 0], sizes = [1, 64], strides = [1, 1]} : vector<8x128xf32> to vector<1x64xf32>
    %4 = vector.extract_strided_slice %0 {offsets = [3, 0], sizes = [1, 32], strides = [1, 1]} : vector<8x128xf32> to vector<1x32xf32>
    %5 = vector.extract_strided_slice %0 {offsets = [4, 0], sizes = [1, 32], strides = [1, 1]} : vector<8x128xf32> to vector<1x32xf32>
    %6 = vector.extract_strided_slice %0 {offsets = [5, 0], sizes = [1, 32], strides = [1, 1]} : vector<8x128xf32> to vector<1x32xf32>
    %7 = vector.extract_strided_slice %0 {offsets = [6, 0], sizes = [1, 32], strides = [1, 1]} : vector<8x128xf32> to vector<1x32xf32>
    %8 = vector.extract_strided_slice %0 {offsets = [7, 0], sizes = [1, 32], strides = [1, 1]} : vector<8x128xf32> to vector<1x32xf32>
    %c0_1 = arith.constant 0 : index
    %c0_2 = arith.constant 0 : index
    %c0_3 = arith.constant 0 : index
    %9 = vector.load %arg1[%c0_1, %c0_2, %c0_3] : memref<2x8x32xf32, #tpu.memory_space<vmem>>, vector<2x8x32xf32>
    %10 = vector.shape_cast %9 : vector<2x8x32xf32> to vector<16x32xf32>
    %c0_4 = arith.constant 0 : index
    %c0_5 = arith.constant 0 : index
    %11 = vector.load %arg3[%c0_4, %c0_5] : memref<96x256xf32, #tpu.memory_space<vmem>>, vector<32x96xf32>
    %cst = arith.constant dense<0.000000e+00> : vector<16x96xf32>
    %12 = tpu.matmul %10, %11, %cst {dimension_numbers = #tpu.dot_dimension_numbers<[1], [0], [0], [1], [0, 0, 1, 1], [], []>} : vector<16x32xf32>, vector<32x96xf32>, vector<16x96xf32> -> vector<16x96xf32>
    %13 = vector.broadcast %1 : vector<1x96xf32> to vector<16x96xf32>
    %14 = arith.addf %12, %13 : vector<16x96xf32>
    %15 = vector.extract_strided_slice %14 {offsets = [0, 0], sizes = [16, 32], strides = [1, 1]} : vector<16x96xf32> to vector<16x32xf32>
    %16 = vector.shape_cast %15 : vector<16x32xf32> to vector<2x8x1x32xf32>
    %17 = vector.extract_strided_slice %14 {offsets = [0, 32], sizes = [16, 32], strides = [1, 1]} : vector<16x96xf32> to vector<16x32xf32>
    %18 = vector.shape_cast %17 : vector<16x32xf32> to vector<2x1x8x32xf32>
    %19 = vector.extract_strided_slice %14 {offsets = [0, 64], sizes = [16, 32], strides = [1, 1]} : vector<16x96xf32> to vector<16x32xf32>
    %20 = vector.shape_cast %19 : vector<16x32xf32> to vector<2x1x8x32xf32>
    %c0_6 = arith.constant 0 : index
    %c0_7 = arith.constant 0 : index
    %c0_8 = arith.constant 0 : index
    %c0_9 = arith.constant 0 : index
    %21 = vector.load %arg2[%c0_6, %c0_7, %c0_8, %c0_9] : memref<2x8x8x32xf32, #tpu.memory_space<vmem>>, vector<2x8x8x32xf32>
    %22 = vector.shape_cast %21 : vector<2x8x8x32xf32> to vector<128x32xf32>
    %c32 = arith.constant 32 : index
    %c128 = arith.constant 128 : index
    %23 = vector.load %arg3[%c32, %c128] : memref<96x256xf32, #tpu.memory_space<vmem>>, vector<32x96xf32>
    %cst_10 = arith.constant dense<0.000000e+00> : vector<128x96xf32>
    %24 = tpu.matmul %22, %23, %cst_10 {dimension_numbers = #tpu.dot_dimension_numbers<[1], [0], [0], [1], [0, 0, 1, 1], [], []>} : vector<128x32xf32>, vector<32x96xf32>, vector<128x96xf32> -> vector<128x96xf32>
    %25 = vector.shape_cast %24 : vector<128x96xf32> to vector<2x8x8x96xf32>
    %26 = vector.extract_strided_slice %25 {offsets = [0, 0, 0, 0], sizes = [2, 8, 8, 32], strides = [1, 1, 1, 1]} : vector<2x8x8x96xf32> to vector<2x8x8x32xf32>
    %27 = vector.extract_strided_slice %25 {offsets = [0, 0, 0, 32], sizes = [2, 8, 8, 32], strides = [1, 1, 1, 1]} : vector<2x8x8x96xf32> to vector<2x8x8x32xf32>
    %28 = vector.extract_strided_slice %21 {offsets = [0, 0, 0, 24], sizes = [2, 8, 8, 4], strides = [1, 1, 1, 1]} : vector<2x8x8x32xf32> to vector<2x8x8x4xf32>
    %29 = vector.broadcast %16 : vector<2x8x1x32xf32> to vector<2x8x8x32xf32>
    %30 = arith.addf %29, %27 : vector<2x8x8x32xf32>
    %31 = vector.broadcast %18 : vector<2x1x8x32xf32> to vector<2x8x8x32xf32>
    %32 = arith.addf %31, %26 : vector<2x8x8x32xf32>
    %33 = arith.mulf %30, %32 : vector<2x8x8x32xf32>
    %34 = vector.shape_cast %33 : vector<2x8x8x32xf32> to vector<128x32xf32>
    %c0_11 = arith.constant 0 : index
    %c224 = arith.constant 224 : index
    %35 = vector.load %arg3[%c0_11, %c224] : memref<96x256xf32, #tpu.memory_space<vmem>>, vector<32x4xf32>
    %cst_12 = arith.constant dense<0.000000e+00> : vector<128x4xf32>
    %36 = tpu.matmul %34, %35, %cst_12 {dimension_numbers = #tpu.dot_dimension_numbers<[1], [0], [0], [1], [0, 0, 1, 1], [], []>} : vector<128x32xf32>, vector<32x4xf32>, vector<128x4xf32> -> vector<128x4xf32>
    %37 = vector.shape_cast %36 : vector<128x4xf32> to vector<2x8x8x4xf32>
    %38 = arith.addf %37, %28 : vector<2x8x8x4xf32>
    %cst_13 = arith.constant dense<0xFF800000> : vector<2x8x4xf32>
    %39 = vector.multi_reduction <maximumf>, %38, %cst_13 [2] : vector<2x8x8x4xf32> to vector<2x8x4xf32>
    %40 = vector.shape_cast %39 : vector<2x8x4xf32> to vector<2x8x1x4xf32>
    %41 = vector.broadcast %40 : vector<2x8x1x4xf32> to vector<2x8x8x4xf32>
    %42 = arith.subf %38, %41 : vector<2x8x8x4xf32>
    %43 = math.exp %42 : vector<2x8x8x4xf32>
    %cst_14 = arith.constant dense<0.000000e+00> : vector<2x8x4xf32>
    %44 = vector.multi_reduction <add>, %43, %cst_14 [2] : vector<2x8x8x4xf32> to vector<2x8x4xf32>
    %45 = vector.shape_cast %44 : vector<2x8x4xf32> to vector<2x8x1x4xf32>
    %46 = vector.broadcast %45 : vector<2x8x1x4xf32> to vector<2x8x8x4xf32>
    %47 = arith.divf %43, %46 : vector<2x8x8x4xf32>
    %48 = vector.shape_cast %47 : vector<2x8x8x4xf32> to vector<128x4xf32>
    %c0_15 = arith.constant 0 : index
    %c192 = arith.constant 192 : index
    %49 = vector.load %arg3[%c0_15, %c192] : memref<96x256xf32, #tpu.memory_space<vmem>>, vector<4x32xf32>
    %cst_16 = arith.constant dense<0.000000e+00> : vector<128x32xf32>
    %50 = tpu.matmul %48, %49, %cst_16 {dimension_numbers = #tpu.dot_dimension_numbers<[1], [0], [0], [1], [0, 0, 1, 1], [], []>} : vector<128x4xf32>, vector<4x32xf32>, vector<128x32xf32> -> vector<128x32xf32>
    %51 = vector.shape_cast %50 : vector<128x32xf32> to vector<2x8x8x32xf32>
    %52 = vector.extract_strided_slice %25 {offsets = [0, 0, 0, 64], sizes = [2, 8, 8, 32], strides = [1, 1, 1, 1]} : vector<2x8x8x96xf32> to vector<2x8x8x32xf32>
    %53 = vector.broadcast %20 : vector<2x1x8x32xf32> to vector<2x8x8x32xf32>
    %54 = arith.addf %53, %52 : vector<2x8x8x32xf32>
    %55 = arith.mulf %51, %54 : vector<2x8x8x32xf32>
    %cst_17 = arith.constant dense<0.000000e+00> : vector<2x8x32xf32>
    %56 = vector.multi_reduction <add>, %55, %cst_17 [2] : vector<2x8x8x32xf32> to vector<2x8x32xf32>
    %57 = vector.shape_cast %56 : vector<2x8x32xf32> to vector<16x32xf32>
    %c0_18 = arith.constant 0 : index
    %c96 = arith.constant 96 : index
    %58 = vector.load %arg3[%c0_18, %c96] : memref<96x256xf32, #tpu.memory_space<vmem>>, vector<32x32xf32>
    %cst_19 = arith.constant dense<0.000000e+00> : vector<16x32xf32>
    %59 = tpu.matmul %57, %58, %cst_19 {dimension_numbers = #tpu.dot_dimension_numbers<[1], [0], [0], [1], [0, 0, 1, 1], [], []>} : vector<16x32xf32>, vector<32x32xf32>, vector<16x32xf32> -> vector<16x32xf32>
    %60 = vector.broadcast %2 : vector<1x32xf32> to vector<16x32xf32>
    %61 = arith.addf %59, %60 : vector<16x32xf32>
    %62 = arith.addf %10, %61 : vector<16x32xf32>
    %cst_20 = arith.constant dense<0.000000e+00> : vector<16xf32>
    %63 = vector.multi_reduction <add>, %62, %cst_20 [1] : vector<16x32xf32> to vector<16xf32>
    %64 = vector.shape_cast %63 : vector<16xf32> to vector<16x1xf32>
    %cst_21 = arith.constant 3.200000e+01 : f32
    %65 = vector.broadcast %cst_21 : f32 to vector<16x1xf32>
    %66 = arith.divf %64, %65 : vector<16x1xf32>
    %67 = vector.broadcast %66 : vector<16x1xf32> to vector<16x32xf32>
    %68 = arith.subf %62, %67 : vector<16x32xf32>
    %69 = arith.mulf %68, %68 : vector<16x32xf32>
    %cst_22 = arith.constant dense<0.000000e+00> : vector<16xf32>
    %70 = vector.multi_reduction <add>, %69, %cst_22 [1] : vector<16x32xf32> to vector<16xf32>
    %71 = vector.shape_cast %70 : vector<16xf32> to vector<16x1xf32>
    %cst_23 = arith.constant 3.200000e+01 : f32
    %72 = vector.broadcast %cst_23 : f32 to vector<16x1xf32>
    %73 = arith.divf %71, %72 : vector<16x1xf32>
    %74 = vector.broadcast %66 : vector<16x1xf32> to vector<16x32xf32>
    %75 = arith.subf %62, %74 : vector<16x32xf32>
    %cst_24 = arith.constant 9.99999974E-6 : f32
    %76 = vector.broadcast %cst_24 : f32 to vector<16x1xf32>
    %77 = arith.addf %73, %76 : vector<16x1xf32>
    %78 = math.rsqrt %77 : vector<16x1xf32>
    %79 = vector.broadcast %78 : vector<16x1xf32> to vector<16x32xf32>
    %80 = arith.mulf %75, %79 : vector<16x32xf32>
    %81 = vector.broadcast %5 : vector<1x32xf32> to vector<16x32xf32>
    %82 = arith.mulf %80, %81 : vector<16x32xf32>
    %83 = vector.broadcast %6 : vector<1x32xf32> to vector<16x32xf32>
    %84 = arith.addf %82, %83 : vector<16x32xf32>
    %c0_25 = arith.constant 0 : index
    %c128_26 = arith.constant 128 : index
    %85 = vector.load %arg3[%c0_25, %c128_26] : memref<96x256xf32, #tpu.memory_space<vmem>>, vector<32x64xf32>
    %cst_27 = arith.constant dense<0.000000e+00> : vector<16x64xf32>
    %86 = tpu.matmul %84, %85, %cst_27 {dimension_numbers = #tpu.dot_dimension_numbers<[1], [0], [0], [1], [0, 0, 1, 1], [], []>} : vector<16x32xf32>, vector<32x64xf32>, vector<16x64xf32> -> vector<16x64xf32>
    %87 = vector.broadcast %3 : vector<1x64xf32> to vector<16x64xf32>
    %88 = arith.addf %86, %87 : vector<16x64xf32>
    %cst_28 = arith.constant 0.000000e+00 : f32
    %89 = vector.broadcast %cst_28 : f32 to vector<16x64xf32>
    %90 = arith.maximumf %88, %89 : vector<16x64xf32>
    %c32_29 = arith.constant 32 : index
    %c0_30 = arith.constant 0 : index
    %91 = vector.load %arg3[%c32_29, %c0_30] : memref<96x256xf32, #tpu.memory_space<vmem>>, vector<64x32xf32>
    %cst_31 = arith.constant dense<0.000000e+00> : vector<16x32xf32>
    %92 = tpu.matmul %90, %91, %cst_31 {dimension_numbers = #tpu.dot_dimension_numbers<[1], [0], [0], [1], [0, 0, 1, 1], [], []>} : vector<16x64xf32>, vector<64x32xf32>, vector<16x32xf32> -> vector<16x32xf32>
    %93 = vector.broadcast %4 : vector<1x32xf32> to vector<16x32xf32>
    %94 = arith.addf %92, %93 : vector<16x32xf32>
    %95 = arith.addf %84, %94 : vector<16x32xf32>
    %cst_32 = arith.constant dense<0.000000e+00> : vector<16xf32>
    %96 = vector.multi_reduction <add>, %95, %cst_32 [1] : vector<16x32xf32> to vector<16xf32>
    %97 = vector.shape_cast %96 : vector<16xf32> to vector<16x1xf32>
    %cst_33 = arith.constant 3.200000e+01 : f32
    %98 = vector.broadcast %cst_33 : f32 to vector<16x1xf32>
    %99 = arith.divf %97, %98 : vector<16x1xf32>
    %100 = vector.broadcast %99 : vector<16x1xf32> to vector<16x32xf32>
    %101 = arith.subf %95, %100 : vector<16x32xf32>
    %102 = arith.mulf %101, %101 : vector<16x32xf32>
    %cst_34 = arith.constant dense<0.000000e+00> : vector<16xf32>
    %103 = vector.multi_reduction <add>, %102, %cst_34 [1] : vector<16x32xf32> to vector<16xf32>
    %104 = vector.shape_cast %103 : vector<16xf32> to vector<16x1xf32>
    %cst_35 = arith.constant 3.200000e+01 : f32
    %105 = vector.broadcast %cst_35 : f32 to vector<16x1xf32>
    %106 = arith.divf %104, %105 : vector<16x1xf32>
    %107 = vector.broadcast %99 : vector<16x1xf32> to vector<16x32xf32>
    %108 = arith.subf %95, %107 : vector<16x32xf32>
    %cst_36 = arith.constant 9.99999974E-6 : f32
    %109 = vector.broadcast %cst_36 : f32 to vector<16x1xf32>
    %110 = arith.addf %106, %109 : vector<16x1xf32>
    %111 = math.rsqrt %110 : vector<16x1xf32>
    %112 = vector.broadcast %111 : vector<16x1xf32> to vector<16x32xf32>
    %113 = arith.mulf %108, %112 : vector<16x32xf32>
    %114 = vector.broadcast %7 : vector<1x32xf32> to vector<16x32xf32>
    %115 = arith.mulf %113, %114 : vector<16x32xf32>
    %116 = vector.broadcast %8 : vector<1x32xf32> to vector<16x32xf32>
    %117 = arith.addf %115, %116 : vector<16x32xf32>
    %118 = vector.shape_cast %117 : vector<16x32xf32> to vector<2x8x32xf32>
    %c0_37 = arith.constant 0 : index
    %c0_38 = arith.constant 0 : index
    %c0_39 = arith.constant 0 : index
    %119 = vector.load %arg5[%c0_37, %c0_38, %c0_39] : memref<2x8x32xf32, #tpu.memory_space<vmem>>, vector<2x8x32xf32>
    tpu.vector_store %arg5[%c0_37, %c0_38, %c0_39], %118 {strides = array<i32>} : memref<2x8x32xf32, #tpu.memory_space<vmem>>, vector<2x8x32xf32>,
    return
  }
  func.func @transform_0(%arg0: i32) -> (i32, i32, i32) {
    %c0_i32 = arith.constant 0 : i32
    %c0_i32_0 = arith.constant 0 : i32
    %c0_i32_1 = arith.constant 0 : i32
    return %arg0, %c0_i32, %c0_i32_0 : i32, i32, i32
  }
  func.func @transform_1(%arg0: i32) -> (i32, i32, i32, i32) {
    %c0_i32 = arith.constant 0 : i32
    %c0_i32_0 = arith.constant 0 : i32
    %c0_i32_1 = arith.constant 0 : i32
    %c0_i32_2 = arith.constant 0 : i32
    return %arg0, %c0_i32, %c0_i32_0, %c0_i32_1 : i32, i32, i32, i32
  }
  func.func @transform_2(%arg0: i32) -> (i32, i32) {
    %c0_i32 = arith.constant 0 : i32
    %c0_i32_0 = arith.constant 0 : i32
    %c0_i32_1 = arith.constant 0 : i32
    return %c0_i32, %c0_i32_0 : i32, i32
  }
  func.func @transform_3(%arg0: i32) -> (i32, i32) {
    %c0_i32 = arith.constant 0 : i32
    %c0_i32_0 = arith.constant 0 : i32
    %c0_i32_1 = arith.constant 0 : i32
    return %c0_i32, %c0_i32_0 : i32, i32
  }
  func.func @transform_4(%arg0: i32) -> (i32, i32, i32) {
    %c0_i32 = arith.constant 0 : i32
    %c0_i32_0 = arith.constant 0 : i32
    %c0_i32_1 = arith.constant 0 : i32
    return %arg0, %c0_i32, %c0_i32_0 : i32, i32, i32
  }
}

</mosaic_0001>

<bundles_post_ra>
// kernel: tpu_custom_call.1
= control target key start
LH: loop header
LB: loop body
LE: loop exit
PB: predicated region body
PF: predicated region fallthrough
CT: control target
= control target key end

     0   :  { %9 = vsyncpa [#allocation3], 0  ;;  %s3503_s0 = inlined_call_operand.hbm [shape: f32[2,8,32], index: 0, kind: input, shape index: {}]   ;;  %s3504_s1 = inlined_call_operand.hbm [shape: f32[2,8,8,32], index: 1, kind: input, shape index: {}]   ;;  %s3505_s2 = inlined_call_operand.hbm [shape: f32[96,256], index: 2, kind: input, shape index: {}]   ;;  %s3506_s3 = inlined_call_operand.vmem [shape: f32[8,128], index: 3, kind: input, shape index: {}]   ;;  %s3507_s4 = inlined_call_operand.hbm [shape: f32[2,8,32], index: 4, kind: output, shape index: {}]  }
   0x1   :  { %10 = vsyncpa [#allocation6], 0 }
   0x2   :  { %11 = vsyncpa [#allocation4], 0  ;;  %s2723_s15 = smov [#allocation5]   ;;  %s2724_s17 = smov [#allocation2]  }
   0x3   :  { %s29_s16 = sshll.u32 %s2723_s15, 4  ;;  %s17_s18 = sshll.u32 %s2724_s17, 4  ;;  %s30_s16 = int_to_ptr.vmem [resolvable:$true] %s29_s16  ;;  %s2761_s18 = int_to_ptr.vmem [resolvable:$true] %s17_s18 }
   0x4   :  { %s2629_s21 = scalar_lea.hbm %s3504_s1, 2048 }
   0x5   :  { %p2630_p0 = scmp.ne.s32.totalorder %s3504_s1, %s2629_s21  ;;  %p2633_p1 = scmp.lt.u32.totalorder %s2629_s21, %s3504_s1 }
   0x7   :  { %p2635_p2 = pnand %p2633_p1, %p2630_p0 }
   0x9   :  { %2638 = shalt.err (!%p2635_p2)
}
   0xa   :  { %s2639_s26 = scalar_lea.vmem %s30_s16, 2048  ;;  %p2644_p4 = scmp.lt.s32.totalorder %s30_s16, %s30_s16 }
   0xb   :  { %p2640_p3 = scmp.ne.s32.totalorder %s30_s16, %s2639_s26  ;;  %p2645_p5 = scmp.lt.s32.totalorder %s2639_s26, %s2639_s26 }
   0xd   :  { %p2646_p6 = por %p2645_p5, %p2644_p4 }
   0xf   :  { %p2647_p7 = pnand %p2646_p6, %p2640_p3 }
  0x11   :  { %2650 = shalt.err (!%p2647_p7)
}
  0x12   :  { %s2725_s27 = smov 128   ;;  %s2726_s28 = smov 8  }
  0x13   :  { %35 = dma.hbm_to_vmem [thread:$0]  %s3504_s1, 2048, %s30_s16, [#allocation6], %s2725_s27, %s2725_s27, %s2726_s28  }
  0x14   :  { %s2651_s7 = scalar_lea.hbm %s3503_s0, 256 }
  0x15   :  { %p2652_p8 = scmp.ne.s32.totalorder %s3503_s0, %s2651_s7  ;;  %p2655_p9 = scmp.lt.u32.totalorder %s2651_s7, %s3503_s0 }
  0x17   :  { %p2657_p10 = pnand %p2655_p9, %p2652_p8 }
  0x19   :  { %2660 = shalt.err (!%p2657_p10)
}
  0x1a   :  { %s2661_s12 = scalar_lea.vmem %s2761_s18, 256  ;;  %p2666_p12 = scmp.lt.s32.totalorder %s2761_s18, %s2761_s18 }
  0x1b   :  { %p2662_p11 = scmp.ne.s32.totalorder %s2761_s18, %s2661_s12  ;;  %p2667_p13 = scmp.lt.s32.totalorder %s2661_s12, %s2661_s12 }
  0x1d   :  { %p2668_p0 = por %p2667_p13, %p2666_p12 }
  0x1f   :  { %p2669_p1 = pnand %p2668_p0, %p2662_p11 }
  0x21   :  { %2672 = shalt.err (!%p2669_p1)
}
  0x22   :  { %23 = dma.hbm_to_vmem [thread:$0]  %s3503_s0, 256, %s2761_s18, [#allocation3], %s2725_s27, %s2725_s27, %s2726_s28  }
  0x23   :  { %s2727_s14 = smov [#allocation7]   ;;  %s2673_s19 = scalar_lea.hbm %s3505_s2, 3072 }
  0x24   :  { %s41_s15 = sshll.u32 %s2727_s14, 4  ;;  %p2674_p2 = scmp.ne.s32.totalorder %s3505_s2, %s2673_s19  ;;  %s42_s15 = int_to_ptr.vmem [resolvable:$true] %s41_s15 }
  0x25   :  { %p2677_p3 = scmp.lt.u32.totalorder %s2673_s19, %s3505_s2 }
  0x27   :  { %p2679_p4 = pnand %p2677_p3, %p2674_p2 }
  0x29   :  { %2682 = shalt.err (!%p2679_p4)
}
  0x2a   :  { %s2683_s24 = scalar_lea.vmem %s42_s15, 3072  ;;  %p2688_p6 = scmp.lt.s32.totalorder %s42_s15, %s42_s15 }
  0x2b   :  { %p2684_p5 = scmp.ne.s32.totalorder %s42_s15, %s2683_s24  ;;  %p2689_p7 = scmp.lt.s32.totalorder %s2683_s24, %s2683_s24 }
  0x2d   :  { %p2690_p8 = por %p2689_p7, %p2688_p6 }
  0x2f   :  { %p2691_p9 = pnand %p2690_p8, %p2684_p5 }
  0x31   :  { %2694 = shalt.err (!%p2691_p9)
}
  0x32   :  { %s2728_s0 = smov 256   ;;  %s2729_s18 = smov 16  }
  0x33   :  { %47 = dma.hbm_to_vmem [thread:$0]  %s3505_s2, 3072, %s42_s15, [#allocation6], %s2728_s0, %s2728_s0, %s2729_s18  }
  0x34   :  { %2717 = dma.done.wait [#allocation3], 256  }
  0x35   :  { %2718 = vsyncadd [#allocation3], 4294967040 }
  0x36   :  { %2719 = dma.done.wait [#allocation6], 5120  }
  0x37   :  { %2720 = vsyncadd [#allocation6], 4294962176  ;;  %v62_v0 = vld [vmem:[#allocation7] sm:$0xff]  ;;  %v63_v1 = vld [vmem:[#allocation7 + $0x10] sm:$0xff]  ;;  %vm70_vm0 = vcmask 261120   ;;  %s2730_s2 = smov 32  }
  0x38   :  { %v268_v2 = vld [vmem:[#allocation7 + $0x48] sm:$0xff]  ;;  %v2465_v3 = vpack.c.bf16 %v63_v1, %v62_v0  ;;  %v269_v4 = vld [vmem:[#allocation7 + $0x58] sm:$0xff]  ;;  %v64_v5 = vld [vmem:[#allocation7 + $0x20] sm:$0xff]  ;;  %s2731_s29 = smov 96   ;;  %v66_v0 = vlaneseq  ;;  %s2732_s6 = smov 104   ;;  %vm1403_vm1 = vcmask 1043456  }
  0x39   :  { %v65_v6 = vld [vmem:[#allocation7 + $0x30] sm:$0xff]  ;;  %v2473_v7 = vpack.c.bf16 %v269_v4, %v268_v2  ;;  %v270_v9 = vld [vmem:[#allocation7 + $0x68] sm:$0xff]  ;;  %v271_v10 = vld [vmem:[#allocation7 + $0x78] sm:$0xff]  ;;  %s2733_s7 = smov 64   ;;  %vm1046_vm2 = vcmask 31744   ;;  %vm1783_vm3 = vcmask 1041409  }
  0x3a   :  { %v2469_v8 = vpack.c.bf16 %v65_v6, %v64_v5  ;;  %v60_v11 = vld [vmem:[#allocation2] sm:$0xff]  ;;  %2466 = vmatprep.subr.bf16.mxu0 %v2465_v3  ;;  %v2477_v12 = vpack.c.bf16 %v271_v10, %v270_v9  ;;  %v2811_v13 = vld [vmem:[#allocation5] sm:$0xff]  ;;  %v61_v14 = vld [vmem:[#allocation2 + $0x8] sm:$0xff]  ;;  %v2980_v1 = vshrl.u32 %v66_v0, 7  ;;  %vm1785_vm4 = vcmask 1042434  }
  0x3b   :  { %2331 = vmatprep.mubr.msk.f32.mxu0 %vm70_vm0, %v60_v11  ;;  %2474 = vmatprep.subr.bf16.mxu1 %v2473_v7  ;;  %v2815_v15 = vld [vmem:[#allocation5 + $0x8] sm:$0xff]  ;;  %v770_v17 = vld [vmem:[#allocation7 + $0x18] sm:$0xff]  ;;  %v2817_v20 = vld [vmem:[#allocation5 + $0x10] sm:$0xff]  ;;  %vm1787_vm5 = vcmask 1043459   ;;  %vm1789_vm6 = vcmask 1044484   ;;  %vm1791_vm7 = vcmask 1045509  }
  0x3c   :  { %2468 = vmatpush3.bf16.msra.mxu0 %v2465_v3  ;;  %2476 = vmatpush3.bf16.msra.mxu1 %v2473_v7  ;;  %v769_v16 = vld [vmem:[#allocation7 + $0x8] sm:$0xff]  ;;  %v772_v19 = vld [vmem:[#allocation7 + $0x38] sm:$0xff]  ;;  %v2832_v26 = vld [vmem:[#allocation5 + $0x20] sm:$0xff]  ;;  %v2983_v2 = vsub.s32 0, %v2980_v1  ;;  %vm1793_vm8 = vcmask 1046534   ;;  %vm1795_vm9 = vcmask 1047559  }
  0x3d   :  { %2470 = vmatprep.subr.bf16.mxu0 %v2469_v8  ;;  %2478 = vmatprep.subr.bf16.mxu1 %v2477_v12  ;;  %v771_v18 = vld [vmem:[#allocation7 + $0x28] sm:$0xff]  ;;  %v2534_v21 = vpack.i.bf16 %v770_v17, %v769_v16  ;;  %v2819_v22 = vpack.c.bf16 %v770_v17, %v769_v16  ;;  %v2829_v25 = vld [vmem:[#allocation5 + $0x18] sm:$0xff]  ;;  %v2840_v28 = vld [vmem:[#allocation5 + $0x30] sm:$0xff]  ;;  %vm2039_vm10 = vcmask 523264  }
  0x3e   :  { %2342 = vmatprep.mubr.msk.f32.mxu1 %vm70_vm0, %v2811_v13  ;;  %v2539_v23 = vpack.i.bf16 %v772_v19, %v771_v18  ;;  %v2821_v24 = vpack.c.bf16 %v772_v19, %v771_v18  ;;  %v2838_v27 = vld [vmem:[#allocation5 + $0x28] sm:$0xff]  ;;  %v2846_v29 = vld [vmem:[#allocation5 + $0x38] sm:$0xff]  ;;  %v2848_v30 = vld [vmem:[#allocation5 + $0x40] sm:$0xff] }
  0x3f   :  { %2535 = vrot.lane.b32.xlu0 %v2534_v21, %s2730_s2  ;;  %v2854_v31 = vld [vmem:[#allocation5 + $0x48] sm:$0xff]  ;;  %v2856_v32 = vld [vmem:[#allocation5 + $0x50] sm:$0xff]  ;;  %v2862_v33 = vld [vmem:[#allocation5 + $0x58] sm:$0xff] }
  0x40   :  { %2472 = vmatpush3.bf16.msra.mxu0 %v2469_v8  ;;  %2480 = vmatpush3.bf16.msra.mxu1 %v2477_v12  ;;  %v2864_v34 = vld [vmem:[#allocation5 + $0x60] sm:$0xff]  ;;  %v2870_v35 = vld [vmem:[#allocation5 + $0x68] sm:$0xff]  ;;  %v2872_v36 = vld [vmem:[#allocation5 + $0x70] sm:$0xff] }
  0x41   :  { %2540 = vrot.lane.b32.xlu1 %v2539_v23, %s2730_s2  ;;  %v2878_v37 = vld [vmem:[#allocation5 + $0x78] sm:$0xff]  ;;  %v59_v3 = vld [vmem:[%s3506_s3] sm:$0xff] }
  0x42   :  { %v69_v4 = vrot.slane %v59_v3, %v2983_v2 }
  0x43   :  { %2332 = vmatmul.mubr.msk.f32.vlgmr.msra.gmra.mrb[0].mxu0 %vm70_vm0, %v61_v14  ;;  %2343 = vmatmul.mubr.msk.f32.vlgmr.msra.gmra.mrb[0].mxu1 %vm70_vm0, %v2815_v15 }
  0x44   :  { %2345 = vmatprep.mubr.msk.f32.mxu1 %vm70_vm0, %v2817_v20 }
  0x47   :  { %2346 = vmatmul.mubr.msk.f32.gmra.mrb[2].mxu1 %vm70_vm0, %v2829_v25 }
  0x48   :  { %2348 = vmatprep.mubr.msk.f32.mxu1 %vm70_vm0, %v2832_v26 }
  0x4b   :  { %2349 = vmatmul.mubr.msk.f32.gmra.mrb[4].mxu1 %vm70_vm0, %v2838_v27 }
  0x4c   :  { %2351 = vmatprep.mubr.msk.f32.mxu1 %vm70_vm0, %v2840_v28 }
  0x4f   :  { %2352 = vmatmul.mubr.msk.f32.gmra.mrb[6].mxu1 %vm70_vm0, %v2846_v29 }
  0x50   :  { %2354 = vmatprep.mubr.msk.f32.mxu1 %vm70_vm0, %v2848_v30 }
  0x53   :  { %2355 = vmatmul.mubr.msk.f32.gmra.mrb[8].mxu1 %vm70_vm0, %v2854_v31 }
  0x54   :  { %2357 = vmatprep.mubr.msk.f32.mxu1 %vm70_vm0, %v2856_v32 }
  0x57   :  { %2358 = vmatmul.mubr.msk.f32.gmra.mrb[10].mxu1 %vm70_vm0, %v2862_v33 }
  0x58   :  { %2360 = vmatprep.mubr.msk.f32.mxu1 %vm70_vm0, %v2864_v34 }
  0x5b   :  { %2361 = vmatmul.mubr.msk.f32.gmra.mrb[12].mxu1 %vm70_vm0, %v2870_v35 }
  0x5c   :  { %2363 = vmatprep.mubr.msk.f32.mxu1 %vm70_vm0, %v2872_v36 }
  0x5f   :  { %2364 = vmatmul.mubr.msk.f32.gmra.mrb[14].mxu1 %vm70_vm0, %v2878_v37 }
  0xb1   :  { %v2536_v38 = vpop.permute.xlu0 %2535 }
  0xb2   :  { %v2538_v40 = vunpack.i.h.bf16 %v2536_v38  ;;  %v2537_v41 = vunpack.i.l.bf16 %v2536_v38 }
  0xb3   :  { %v2541_v39 = vpop.permute.xlu1 %2540 }
  0xb4   :  { %v2543_v42 = vunpack.i.h.bf16 %v2541_v39  ;;  %v2542_v43 = vunpack.i.l.bf16 %v2541_v39  ;;  %v2481_v44 = vpack.c.bf16 %v2538_v40, %v2537_v41 }
  0xb6   :  { %v2485_v45 = vpack.c.bf16 %v2543_v42, %v2542_v43  ;;  %2482 = vmatprep.subr.bf16.mxu0 %v2481_v44 }
  0xb7   :  { %2484 = vmatpush3.bf16.msra.mxu0 %v2481_v44 }
  0xb8   :  { %2486 = vmatprep.subr.bf16.mxu0 %v2485_v45 }
  0xbb   :  { %2488 = vmatpush3.bf16.msra.mxu0 %v2485_v45 }
 0x116   :  { %v2882_v46 = vpop.f32.mrb[0].mxu0  ;;  %v2884_v47 = vpop.f32.mrb[0].mxu1 }
 0x117   :  { %v143_v48 = vpop.f32.mrb[1].mxu0  ;;  %627 = vrot.lane.b32.xlu0 %v2884_v47, %s2730_s2  ;;  %v2888_v49 = vpop.f32.mrb[1].mxu1  ;;  %v3008_v40 = vadd.f32 %v2882_v46, %v69_v4 }
 0x118   :  { %v2989_v5 = vadd.f32 %v143_v48, %v69_v4 }
 0x11a   :  { %v2890_v50 = vpop.f32.mrb[2].mxu1 }
 0x11b   :  { %625 = vrot.lane.b32.xlu0 %v2888_v49, %s2730_s2  ;;  %631 = vrot.lane.b32.xlu1 %v2890_v50, %s2730_s2  ;;  %v2896_v51 = vpop.f32.mrb[3].mxu1 }
 0x11e   :  { %v2898_v52 = vpop.f32.mrb[4].mxu1 }
 0x11f   :  { %561 = vrot.lane.b32.xlu0 %v2888_v49, %s2731_s29  ;;  %629 = vrot.lane.b32.xlu1 %v2896_v51, %s2730_s2  ;;  %v2904_v53 = vpop.f32.mrb[5].mxu1 }
 0x122   :  { %v2906_v54 = vpop.f32.mrb[6].mxu1 }
 0x123   :  { %563 = vrot.lane.b32.xlu1 %v2884_v47, %s2731_s29  ;;  %633 = vrot.lane.b32.xlu0 %v2904_v53, %s2730_s2  ;;  %v2912_v55 = vpop.f32.mrb[7].mxu1 }
 0x126   :  { %v2914_v56 = vpop.f32.mrb[8].mxu1 }
 0x127   :  { %635 = vrot.lane.b32.xlu1 %v2898_v52, %s2730_s2  ;;  %637 = vrot.lane.b32.xlu0 %v2912_v55, %s2730_s2  ;;  %v2920_v57 = vpop.f32.mrb[9].mxu1 }
 0x12a   :  { %v2922_v58 = vpop.f32.mrb[10].mxu1 }
 0x12b   :  { %639 = vrot.lane.b32.xlu1 %v2906_v54, %s2730_s2  ;;  %641 = vrot.lane.b32.xlu0 %v2920_v57, %s2730_s2  ;;  %v2928_v59 = vpop.f32.mrb[11].mxu1 }
 0x12e   :  { %v2930_v60 = vpop.f32.mrb[12].mxu1 }
 0x12f   :  { %643 = vrot.lane.b32.xlu1 %v2914_v56, %s2730_s2  ;;  %645 = vrot.lane.b32.xlu0 %v2928_v59, %s2730_s2  ;;  %v2936_v61 = vpop.f32.mrb[13].mxu1 }
 0x132   :  { %v2938_v62 = vpop.f32.mrb[14].mxu1 }
 0x133   :  { %647 = vrot.lane.b32.xlu1 %v2922_v58, %s2730_s2  ;;  %649 = vrot.lane.b32.xlu0 %v2936_v61, %s2730_s2  ;;  %v2944_v63 = vpop.f32.mrb[15].mxu1 }
 0x137   :  { %651 = vrot.lane.b32.xlu1 %v2930_v60, %s2730_s2  ;;  %653 = vrot.lane.b32.xlu0 %v2944_v63, %s2730_s2 }
 0x13b   :  { %655 = vrot.lane.b32.xlu1 %v2938_v62, %s2730_s2  ;;  %565 = vrot.lane.b32.xlu0 %v2896_v51, %s2731_s29 }
 0x13f   :  { %567 = vrot.lane.b32.xlu1 %v2890_v50, %s2731_s29  ;;  %569 = vrot.lane.b32.xlu0 %v2904_v53, %s2731_s29 }
 0x143   :  { %571 = vrot.lane.b32.xlu1 %v2898_v52, %s2731_s29  ;;  %573 = vrot.lane.b32.xlu0 %v2912_v55, %s2731_s29 }
 0x147   :  { %575 = vrot.lane.b32.xlu1 %v2906_v54, %s2731_s29  ;;  %577 = vrot.lane.b32.xlu0 %v2920_v57, %s2731_s29 }
 0x14b   :  { %579 = vrot.lane.b32.xlu1 %v2914_v56, %s2731_s29  ;;  %581 = vrot.lane.b32.xlu0 %v2928_v59, %s2731_s29 }
 0x14f   :  { %583 = vrot.lane.b32.xlu1 %v2922_v58, %s2731_s29  ;;  %585 = vrot.lane.b32.xlu0 %v2936_v61, %s2731_s29 }
 0x153   :  { %587 = vrot.lane.b32.xlu1 %v2930_v60, %s2731_s29  ;;  %589 = vrot.lane.b32.xlu0 %v2944_v63, %s2731_s29 }
 0x157   :  { %591 = vrot.lane.b32.xlu1 %v2938_v62, %s2731_s29 }
 0x189   :  { %v628_v6 = vpop.permute.xlu0 %627 }
 0x18a   :  { %v674_v7 = vadd.f32 %v628_v6, %v2989_v5 }
 0x18c   :  { %707 = vrot.lane.b32.xlu1 %v674_v7, %s2731_s29 }
 0x18d   :  { %v626_v8 = vpop.permute.xlu0 %625  ;;  %v632_v9 = vpop.permute.xlu1 %631 }
 0x18e   :  { %v673_v10 = vadd.f32 %v626_v8, %v2989_v5  ;;  %v676_v11 = vadd.f32 %v632_v9, %v2989_v5 }
 0x190   :  { %711 = vrot.lane.b32.xlu1 %v676_v11, %s2731_s29  ;;  %705 = vrot.lane.b32.xlu0 %v673_v10, %s2731_s29 }
 0x191   :  { %v2997_v12 = vpop.permute.xlu0 %561  ;;  %v630_v14 = vpop.permute.xlu1 %629 }
 0x192   :  { %v675_v16 = vadd.f32 %v630_v14, %v2989_v5 }
 0x194   :  { %709 = vrot.lane.b32.xlu0 %v675_v16, %s2731_s29 }
 0x195   :  { %v3001_v17 = vpop.permute.xlu1 %563  ;;  %v634_v18 = vpop.permute.xlu0 %633 }
 0x196   :  { %v677_v19 = vadd.f32 %v634_v18, %v2989_v5 }
 0x198   :  { %713 = vrot.lane.b32.xlu0 %v677_v19, %s2731_s29 }
 0x199   :  { %v636_v21 = vpop.permute.xlu1 %635  ;;  %v638_v23 = vpop.permute.xlu0 %637 }
 0x19a   :  { %v678_v38 = vadd.f32 %v636_v21, %v2989_v5  ;;  %v679_v39 = vadd.f32 %v638_v23, %v2989_v5 }
 0x19c   :  { %715 = vrot.lane.b32.xlu1 %v678_v38, %s2731_s29  ;;  %717 = vrot.lane.b32.xlu0 %v679_v39, %s2731_s29  ;;  %v154_v39 = vcombine.high %v2989_v5, %v2989_v5 }
 0x19d   :  { %v640_v41 = vpop.permute.xlu1 %639  ;;  %v642_v42 = vpop.permute.xlu0 %641 }
 0x19e   :  { %v680_v43 = vadd.f32 %v640_v41, %v2989_v5  ;;  %v681_v44 = vadd.f32 %v642_v42, %v3008_v40 }
 0x1a0   :  { %719 = vrot.lane.b32.xlu1 %v680_v43, %s2731_s29  ;;  %721 = vrot.lane.b32.xlu0 %v681_v44, %s2731_s29 }
 0x1a1   :  { %v644_v45 = vpop.permute.xlu1 %643  ;;  %v646_v48 = vpop.permute.xlu0 %645 }
 0x1a2   :  { %v682_v0 = vadd.f32 %v644_v45, %v3008_v40  ;;  %v683_v46 = vadd.f32 %v646_v48, %v3008_v40 }
 0x1a4   :  { %723 = vrot.lane.b32.xlu1 %v682_v0, %s2731_s29  ;;  %725 = vrot.lane.b32.xlu0 %v683_v46, %s2731_s29 }
 0x1a5   :  { %v648_v3 = vpop.permute.xlu1 %647  ;;  %v650_v4 = vpop.permute.xlu0 %649 }
 0x1a6   :  { %v684_v6 = vadd.f32 %v648_v3, %v3008_v40  ;;  %v685_v7 = vadd.f32 %v650_v4, %v3008_v40 }
 0x1a8   :  { %727 = vrot.lane.b32.xlu1 %v684_v6, %s2731_s29  ;;  %729 = vrot.lane.b32.xlu0 %v685_v7, %s2731_s29 }
 0x1a9   :  { %v652_v8 = vpop.permute.xlu1 %651  ;;  %v654_v9 = vpop.permute.xlu0 %653 }
 0x1aa   :  { %v686_v10 = vadd.f32 %v652_v8, %v3008_v40  ;;  %v687_v11 = vadd.f32 %v654_v9, %v3008_v40 }
 0x1ac   :  { %731 = vrot.lane.b32.xlu1 %v686_v10, %s2731_s29  ;;  %733 = vrot.lane.b32.xlu0 %v687_v11, %s2731_s29 }
 0x1ad   :  { %v656_v14 = vpop.permute.xlu1 %655 }
 0x1ae   :  { %v688_v16 = vadd.f32 %v656_v14, %v3008_v40 }
 0x1b0   :  { %735 = vrot.lane.b32.xlu1 %v688_v16, %s2731_s29  ;;  %982 = vrot.lane.b32.xlu0 %v2811_v13, %s2732_s6  ;;  %v1351_v13 = vld [vmem:[#allocation7 + $0x8] sm:$0xf] }
 0x1b4   :  { %984 = vrot.lane.b32.xlu1 %v2815_v15, %s2732_s6  ;;  %986 = vrot.lane.b32.xlu0 %v2817_v20, %s2732_s6  ;;  %v1551_v15 = vadd.f32 %v2888_v49, %v2989_v5  ;;  %v1552_v20 = vadd.f32 %v2884_v47, %v2989_v5  ;;  %v1557_v47 = vadd.f32 %v2912_v55, %v2989_v5 }
 0x1b5   :  { %v1563_v49 = vadd.f32 %v2936_v61, %v3008_v40  ;;  %v1565_v61 = vadd.f32 %v2944_v63, %v3008_v40 }
 0x1b8   :  { %988 = vrot.lane.b32.xlu1 %v2829_v25, %s2732_s6  ;;  %990 = vrot.lane.b32.xlu0 %v2832_v26, %s2732_s6  ;;  %v1553_v25 = vadd.f32 %v2896_v51, %v2989_v5  ;;  %v1559_v26 = vadd.f32 %v2920_v57, %v3008_v40  ;;  %v2734_v51 = vmov 1966171168   ;;  %v1564_v57 = vadd.f32 %v2930_v60, %v3008_v40 }
 0x1bc   :  { %992 = vrot.lane.b32.xlu1 %v2838_v27, %s2732_s6  ;;  %994 = vrot.lane.b32.xlu0 %v2840_v28, %s2732_s6  ;;  %v3057_v27 = vpop.permute.xlu1 %567  ;;  %v1554_v28 = vadd.f32 %v2890_v50, %v2989_v5 }
 0x1c0   :  { %996 = vrot.lane.b32.xlu1 %v2846_v29, %s2732_s6  ;;  %998 = vrot.lane.b32.xlu0 %v2848_v30, %s2732_s6  ;;  %v1560_v29 = vadd.f32 %v2914_v56, %v3008_v40  ;;  %v566_v30 = vpop.permute.xlu0 %565  ;;  %v1558_v56 = vadd.f32 %v2906_v54, %v2989_v5 }
 0x1c4   :  { %1000 = vrot.lane.b32.xlu1 %v2854_v31, %s2732_s6  ;;  %1002 = vrot.lane.b32.xlu0 %v2856_v32, %s2732_s6  ;;  %v3067_v31 = vpop.permute.xlu1 %571  ;;  %v1555_v32 = vadd.f32 %v2904_v53, %v2989_v5  ;;  %v156_v53 = vunpack.c.l.s4 %v2734_v51 }
 0x1c6   :  { %v157_v55 = vunpack.c.0.s8 %v156_v53 }
 0x1c8   :  { %1004 = vrot.lane.b32.xlu1 %v2862_v33, %s2732_s6  ;;  %1006 = vrot.lane.b32.xlu0 %v2864_v34, %s2732_s6  ;;  %v1561_v33 = vadd.f32 %v2928_v59, %v3008_v40  ;;  %v3073_v34 = vpop.permute.xlu0 %569  ;;  %v1566_v59 = vadd.f32 %v2938_v62, %v3008_v40  ;;  %v3110_v54 = vsub.s32 %v157_v55, %v2980_v1 }
 0x1ca   :  { %v161_v19 = vrot.slane %v2989_v5, %v3110_v54  ;;  %v168_v48 = vrot.slane %v154_v39, %v3110_v54 }
 0x1cc   :  { %1008 = vrot.lane.b32.xlu1 %v2870_v35, %s2732_s6  ;;  %1010 = vrot.lane.b32.xlu0 %v2872_v36, %s2732_s6  ;;  %v1556_v35 = vadd.f32 %v2898_v52, %v2989_v5  ;;  %v1562_v36 = vadd.f32 %v2922_v58, %v3008_v40  ;;  %v3089_v50 = vpop.permute.xlu0 %573  ;;  %v169_v62 = vcombine.high %v161_v19, %v161_v19 }
 0x1cd   :  { %v177_v63 = vrot.slane %v161_v19, %v3110_v54  ;;  %v184_v7 = vrot.slane %v168_v48, %v3110_v54  ;;  %v170_v8 = vcombine.high %v168_v48, %v168_v48 }
 0x1ce   :  { %v191_v38 = vrot.slane %v169_v62, %v3110_v54 }
 0x1cf   :  { %v468_v42 = vrot.slane %v177_v63, %v2983_v2  ;;  %v199_v45 = vcombine.high %v177_v63, %v177_v63 }
 0x1d0   :  { %1012 = vrot.lane.b32.xlu1 %v2878_v37, %s2732_s6  ;;  %1353 = vrot.lane.b32.xlu0 %v1351_v13, %s2733_s7  ;;  %v3081_v37 = vpop.permute.xlu1 %575  ;;  %v3099_v58 = vpop.permute.xlu0 %577  ;;  %v472_v43 = vrot.slane %v191_v38, %v2983_v2  ;;  %v201_v46 = vcombine.high %v191_v38, %v191_v38 }
 0x1d1   :  { %v609_v3 = vadd.f32 %v2997_v12, %v468_v42  ;;  %v476_v5 = vrot.slane %v199_v45, %v2983_v2  ;;  %v210_v12 = vrot.slane %v3008_v40, %v3110_v54 }
 0x1d2   :  { %v610_v4 = vadd.f32 %v3001_v17, %v472_v43  ;;  %v480_v10 = vrot.slane %v201_v46, %v2983_v2 }
 0x1d3   :  { %v611_v14 = vadd.f32 %v566_v30, %v476_v5  ;;  %v226_v30 = vrot.slane %v210_v12, %v3110_v54 }
 0x1d4   :  { %1583 = vrot.lane.b32.xlu1 %v1551_v15, %s2733_s7  ;;  %1585 = vrot.lane.b32.xlu0 %v1552_v20, %s2733_s7  ;;  %v3093_v52 = vpop.permute.xlu1 %579  ;;  %v3114_v60 = vpop.permute.xlu0 %581  ;;  %v612_v13 = vadd.f32 %v3057_v27, %v480_v10  ;;  %v484_v15 = vrot.slane %v184_v7, %v2983_v2  ;;  %v198_v20 = vrot.slane %v170_v8, %v3110_v54 }
 0x1d5   :  { %v218_v27 = vcombine.high %v210_v12, %v210_v12  ;;  %v500_v53 = vrot.slane %v226_v30, %v2983_v2 }
 0x1d8   :  { %1587 = vrot.lane.b32.xlu1 %v1553_v25, %s2733_s7  ;;  %1599 = vrot.lane.b32.xlu0 %v1559_v26, %s2733_s7  ;;  %v3107_v18 = vpop.permute.xlu1 %583  ;;  %v3120_v23 = vpop.permute.xlu0 %585  ;;  %v200_v25 = vcombine.high %v184_v7, %v184_v7 }
 0x1dc   :  { %1601 = vrot.lane.b32.xlu1 %v1560_v29, %s2733_s7  ;;  %1589 = vrot.lane.b32.xlu0 %v1554_v28, %s2733_s7  ;;  %v3118_v21 = vpop.permute.xlu1 %587  ;;  %v3130_v44 = vpop.permute.xlu0 %589  ;;  %v613_v29 = vadd.f32 %v3073_v34, %v484_v15 }
 0x1e0   :  { %1603 = vrot.lane.b32.xlu1 %v1561_v33, %s2733_s7  ;;  %1591 = vrot.lane.b32.xlu0 %v1555_v32, %s2733_s7  ;;  %v3126_v41 = vpop.permute.xlu1 %591  ;;  %v203_v32 = vcombine.high %v3008_v40, %v3008_v40 }
 0x1e2   :  { %v217_v40 = vrot.slane %v203_v32, %v3110_v54 }
 0x1e4   :  { %1605 = vrot.lane.b32.xlu1 %v1562_v36, %s2733_s7  ;;  %1593 = vrot.lane.b32.xlu0 %v1556_v35, %s2733_s7  ;;  %v488_v35 = vrot.slane %v198_v20, %v2983_v2  ;;  %v492_v36 = vrot.slane %v200_v25, %v2983_v2  ;;  %v219_v39 = vcombine.high %v217_v40, %v217_v40 }
 0x1e5   :  { %v233_v48 = vrot.slane %v217_v40, %v3110_v54 }
 0x1e6   :  { %v614_v51 = vadd.f32 %v3067_v31, %v488_v35  ;;  %v615_v34 = vadd.f32 %v3089_v50, %v492_v36  ;;  %v617_v31 = vadd.f32 %v3099_v58, %v500_v53 }
 0x1e7   :  { %v516_v7 = vrot.slane %v233_v48, %v2983_v2  ;;  %v249_v8 = vcombine.high %v233_v48, %v233_v48 }
 0x1e8   :  { %1607 = vrot.lane.b32.xlu1 %v1563_v49, %s2733_s7  ;;  %1595 = vrot.lane.b32.xlu0 %v1557_v47, %s2733_s7  ;;  %v202_v47 = vcombine.high %v198_v20, %v198_v20 }
 0x1ec   :  { %1609 = vrot.lane.b32.xlu1 %v1564_v57, %s2733_s7  ;;  %1597 = vrot.lane.b32.xlu0 %v1558_v56, %s2733_s7  ;;  %v240_v56 = vrot.slane %v218_v27, %v3110_v54 }
 0x1ee   :  { %v504_v50 = vrot.slane %v240_v56, %v2983_v2  ;;  %v250_v38 = vcombine.high %v240_v56, %v240_v56  ;;  %v1762_v56 = vld [vmem:[#allocation7 + $0x30] sm:$0xff] }
 0x1f0   :  { %1611 = vrot.lane.b32.xlu1 %v1565_v61, %s2733_s7  ;;  %1613 = vrot.lane.b32.xlu0 %v1566_v59, %s2733_s7  ;;  %v496_v59 = vrot.slane %v202_v47, %v2983_v2  ;;  %v248_v61 = vcombine.high %v226_v30, %v226_v30 }
 0x1f2   :  { %v616_v63 = vadd.f32 %v3081_v37, %v496_v59  ;;  %v508_v45 = vrot.slane %v248_v61, %v2983_v2  ;;  %v618_v37 = vadd.f32 %v3093_v52, %v504_v50  ;;  %v621_v52 = vadd.f32 %v3120_v23, %v516_v7 }
 0x1f4   :  { %v619_v58 = vadd.f32 %v3114_v60, %v508_v45 }
 0x1fe   :  { %v708_v0 = vpop.permute.xlu1 %707 }
 0x1ff   :  { %v754_v11 = vmul.f32 %v708_v0, %v610_v4  ;;  %v247_v4 = vrot.slane %v219_v39, %v3110_v54  ;;  %v524_v54 = vrot.slane %v249_v8, %v2983_v2 }
 0x201   :  { %v520_v60 = vrot.slane %v247_v4, %v2983_v2  ;;  %v623_v20 = vadd.f32 %v3130_v44, %v524_v54 }
 0x202   :  { %v706_v6 = vpop.permute.xlu0 %705  ;;  %v712_v16 = vpop.permute.xlu1 %711 }
 0x203   :  { %v753_v9 = vmul.f32 %v706_v6, %v609_v3  ;;  %v756_v28 = vmul.f32 %v712_v16, %v612_v13  ;;  %v512_v3 = vrot.slane %v250_v38, %v2983_v2  ;;  %v251_v13 = vcombine.high %v247_v4, %v247_v4 }
 0x204   :  { %v622_v15 = vadd.f32 %v3118_v21, %v520_v60 }
 0x205   :  { %2374 = vmatprep.mubr.msk.f32.mxu0 %vm70_vm0, %v753_v9  ;;  %v528_v25 = vrot.slane %v251_v13, %v2983_v2 }
 0x206   :  { %v710_v17 = vpop.permute.xlu0 %709  ;;  %2375 = vmatmul.mubr.msk.f32.vlgmr.msra.gmra.mrb[2].mxu0 %vm70_vm0, %v754_v11  ;;  %v620_v11 = vadd.f32 %v3107_v18, %v512_v3 }
 0x207   :  { %v755_v26 = vmul.f32 %v710_v17, %v611_v14 }
 0x209   :  { %2377 = vmatprep.mubr.msk.f32.mxu0 %vm70_vm0, %v755_v26 }
 0x20a   :  { %v714_v33 = vpop.permute.xlu0 %713  ;;  %2378 = vmatmul.mubr.msk.f32.gmra.mrb[4].mxu0 %vm70_vm0, %v756_v28 }
 0x20b   :  { %v757_v49 = vmul.f32 %v714_v33, %v613_v29  ;;  %v624_v29 = vadd.f32 %v3126_v41, %v528_v25 }
 0x20d   :  { %2380 = vmatprep.mubr.msk.f32.mxu0 %vm70_vm0, %v757_v49  ;;  %v1759_v49 = vld [vmem:[#allocation7] sm:$0xff] }
 0x20e   :  { %v716_v57 = vpop.permute.xlu1 %715  ;;  %v718_v55 = vpop.permute.xlu0 %717 }
 0x20f   :  { %v758_v19 = vmul.f32 %v716_v57, %v614_v51  ;;  %v759_v62 = vmul.f32 %v718_v55, %v615_v34  ;;  %v1760_v51 = vld [vmem:[#allocation7 + $0x10] sm:$0xff]  ;;  %v1761_v34 = vld [vmem:[#allocation7 + $0x20] sm:$0xff] }
 0x210   :  { %v2544_v53 = vpack.i.bf16 %v1760_v51, %v1759_v49  ;;  %v2549_v40 = vpack.i.bf16 %v1762_v56, %v1761_v34 }
 0x211   :  { %2381 = vmatmul.mubr.msk.f32.gmra.mrb[6].mxu0 %vm70_vm0, %v758_v19 }
 0x212   :  { %v720_v42 = vpop.permute.xlu1 %719  ;;  %v722_v43 = vpop.permute.xlu0 %721  ;;  %2383 = vmatprep.mubr.msk.f32.mxu0 %vm70_vm0, %v759_v62  ;;  %2545 = vrot.lane.b32.xlu1 %v2544_v53, %s2730_s2 }
 0x213   :  { %v760_v0 = vmul.f32 %v720_v42, %v616_v63  ;;  %v761_v46 = vmul.f32 %v722_v43, %v617_v31  ;;  %2550 = vrot.lane.b32.xlu0 %v2549_v40, %s2730_s2 }
 0x215   :  { %2384 = vmatmul.mubr.msk.f32.gmra.mrb[8].mxu0 %vm70_vm0, %v760_v0 }
 0x216   :  { %v724_v6 = vpop.permute.xlu1 %723  ;;  %v726_v5 = vpop.permute.xlu0 %725  ;;  %2386 = vmatprep.mubr.msk.f32.mxu0 %vm70_vm0, %v761_v46 }
 0x217   :  { %v762_v9 = vmul.f32 %v724_v6, %v618_v37  ;;  %v763_v10 = vmul.f32 %v726_v5, %v619_v58 }
 0x219   :  { %2387 = vmatmul.mubr.msk.f32.gmra.mrb[10].mxu0 %vm70_vm0, %v762_v9 }
 0x21a   :  { %v728_v14 = vpop.permute.xlu1 %727  ;;  %v730_v16 = vpop.permute.xlu0 %729  ;;  %2389 = vmatprep.mubr.msk.f32.mxu0 %vm70_vm0, %v763_v10 }
 0x21b   :  { %v764_v12 = vmul.f32 %v728_v14, %v620_v11  ;;  %v765_v17 = vmul.f32 %v730_v16, %v621_v52 }
 0x21d   :  { %2390 = vmatmul.mubr.msk.f32.gmra.mrb[12].mxu0 %vm70_vm0, %v764_v12 }
 0x21e   :  { %v732_v18 = vpop.permute.xlu1 %731  ;;  %v734_v23 = vpop.permute.xlu0 %733  ;;  %2392 = vmatprep.mubr.msk.f32.mxu0 %vm70_vm0, %v765_v17 }
 0x21f   :  { %v766_v26 = vmul.f32 %v732_v18, %v622_v15  ;;  %v767_v28 = vmul.f32 %v734_v23, %v623_v20 }
 0x221   :  { %2393 = vmatmul.mubr.msk.f32.gmra.mrb[14].mxu0 %vm70_vm0, %v766_v26 }
 0x222   :  { %v736_v30 = vpop.permute.xlu1 %735  ;;  %2395 = vmatprep.mubr.msk.f32.mxu0 %vm70_vm0, %v767_v28  ;;  %v983_v44 = vpop.permute.xlu0 %982 }
 0x223   :  { %v768_v21 = vmul.f32 %v736_v30, %v624_v29 }
 0x225   :  { %2396 = vmatmul.mubr.msk.f32.gmra.mrb[16].mxu0 %vm70_vm0, %v768_v21 }
 0x226   :  { %v987_v27 = vpop.permute.xlu0 %986  ;;  %v985_v57 = vpop.permute.xlu1 %984 }
 0x22a   :  { %v991_v32 = vpop.permute.xlu0 %990  ;;  %v989_v59 = vpop.permute.xlu1 %988 }
 0x22e   :  { %v3189_v33 = vpop.permute.xlu0 %994  ;;  %v993_v0 = vpop.permute.xlu1 %992 }
 0x232   :  { %v3191_v35 = vpop.permute.xlu0 %998  ;;  %v997_v54 = vpop.permute.xlu1 %996 }
 0x236   :  { %v3193_v2 = vpop.permute.xlu0 %1002 }
 0x23a   :  { %v3195_v36 = vpop.permute.xlu0 %1006 }
 0x23e   :  { %v3197_v41 = vpop.permute.xlu0 %1010 }
 0x242   :  { %v1354_v47 = vpop.permute.xlu0 %1353 }
 0x243   :  { %2398 = vmatprep.subr.msk.mxu1 %vm1403_vm1, %v1354_v47 }
 0x244   :  { %2399 = vmatpush3.msk.msra.mxu1 %vm1403_vm1, %v1354_v47 }
 0x2d9   :  { %v2376_v55 = vpop.f32.mrb[2].mxu0 }
 0x2da   :  { %v1031_v61 = vadd.f32 %v2376_v55, %v985_v57  ;;  %v903_v19 = vpop.f32.mrb[3].mxu0  ;;  %v1001_v55 = vpop.permute.xlu1 %1000 }
 0x2db   :  { %v1030_v62 = vadd.f32 %v983_v44, %v903_v19 }
 0x2dc   :  { %v1054_v63 = vsel %vm1046_vm2, %v1031_v61, -inf }
 0x2dd   :  { %v1055_v31 = vrot.slane %v1054_v63, 4  ;;  %v1047_v50 = vsel %vm1046_vm2, %v1030_v62, -inf  ;;  %v2379_v38 = vpop.f32.mrb[4].mxu0 }
 0x2de   :  { %v1048_v39 = vrot.slane %v1047_v50, 4  ;;  %v1033_v42 = vadd.f32 %v2379_v38, %v989_v59  ;;  %v913_v43 = vpop.f32.mrb[5].mxu0 }
 0x2df   :  { %v1056_v45 = vmax.f32 %v1054_v63, %v1055_v31  ;;  %v1032_v48 = vadd.f32 %v987_v27, %v913_v43 }
 0x2e0   :  { %v1049_v46 = vmax.f32 %v1047_v50, %v1048_v39  ;;  %v1068_v37 = vsel %vm1046_vm2, %v1033_v42, -inf }
 0x2e1   :  { %v1057_v58 = vrot.slane %v1056_v45, 2  ;;  %v1069_v3 = vrot.slane %v1068_v37, 4  ;;  %v1061_v4 = vsel %vm1046_vm2, %v1032_v48, -inf }
 0x2e2   :  { %v1050_v6 = vrot.slane %v1049_v46, 2  ;;  %v1062_v5 = vrot.slane %v1061_v4, 4 }
 0x2e3   :  { %v1058_v7 = vmax.f32 %v1056_v45, %v1057_v58  ;;  %v1070_v8 = vmax.f32 %v1068_v37, %v1069_v3 }
 0x2e4   :  { %v1051_v9 = vmax.f32 %v1049_v46, %v1050_v6  ;;  %v1063_v10 = vmax.f32 %v1061_v4, %v1062_v5  ;;  %v2382_v11 = vpop.f32.mrb[6].mxu0 }
 0x2e5   :  { %v1059_v52 = vrot.slane %v1058_v7, 1  ;;  %v1071_v60 = vrot.slane %v1070_v8, 2  ;;  %v3205_v14 = vadd.f32 %v2382_v11, %v993_v0  ;;  %v923_v16 = vpop.f32.mrb[7].mxu0 }
 0x2e6   :  { %v1052_v13 = vrot.slane %v1051_v9, 1  ;;  %v1064_v12 = vrot.slane %v1063_v10, 2  ;;  %v3207_v17 = vadd.f32 %v991_v32, %v923_v16 }
 0x2e7   :  { %v1060_v15 = vmax.f32 %v1058_v7, %v1059_v52  ;;  %v1072_v20 = vmax.f32 %v1070_v8, %v1071_v60  ;;  %v1082_v18 = vsel %vm1046_vm2, %v3205_v14, -inf }
 0x2e8   :  { %v1053_v23 = vmax.f32 %v1051_v9, %v1052_v13  ;;  %v1065_v25 = vmax.f32 %v1063_v10, %v1064_v12  ;;  %v1083_v26 = vrot.slane %v1082_v18, 4  ;;  %v1075_v28 = vsel %vm1046_vm2, %v3207_v17, -inf  ;;  %v2385_v29 = vpop.f32.mrb[8].mxu0  ;;  %v1005_v10 = vpop.permute.xlu1 %1004 }
 0x2e9   :  { %v1160_v30 = vsub.f32 %v1031_v61, %v1060_v15  ;;  %v1073_v21 = vrot.slane %v1072_v20, 1  ;;  %v1076_v44 = vrot.slane %v1075_v28, 4  ;;  %v3213_v27 = vadd.f32 %v2385_v29, %v997_v54  ;;  %v933_v47 = vpop.f32.mrb[9].mxu0 }
 0x2ea   :  { %v1159_v32 = vsub.f32 %v1030_v62, %v1053_v23  ;;  %v1066_v49 = vrot.slane %v1065_v25, 1  ;;  %v1084_v51 = vmax.f32 %v1082_v18, %v1083_v26  ;;  %v3216_v34 = vadd.f32 %v3189_v33, %v933_v47 }
 0x2eb   :  { %v1177_v53 = vmul.f32 1.442695, %v1160_v30  ;;  %v1074_v56 = vmax.f32 %v1072_v20, %v1073_v21  ;;  %v1077_v40 = vmax.f32 %v1075_v28, %v1076_v44  ;;  %v1096_v57 = vsel %vm1046_vm2, %v3213_v27, -inf }
 0x2ec   :  { %v1175_v59 = vmul.f32 1.442695, %v1159_v32  ;;  %v1067_v61 = vmax.f32 %v1065_v25, %v1066_v49  ;;  %v1085_v19 = vrot.slane %v1084_v51, 2  ;;  %v1097_v63 = vrot.slane %v1096_v57, 4  ;;  %v2388_v31 = vpop.f32.mrb[10].mxu0 }
 0x2ed   :  { %2554 = vpow2.f32 %v1177_v53  ;;  %v1162_v50 = vsub.f32 %v1033_v42, %v1074_v56  ;;  %v1078_v62 = vrot.slane %v1077_v40, 2  ;;  %v1089_v38 = vsel %vm1046_vm2, %v3216_v34, -inf  ;;  %v943_v33 = vpop.f32.mrb[11].mxu0 }
 0x2ee   :  { %2556 = vpow2.f32 %v1175_v59  ;;  %v1161_v39 = vsub.f32 %v1032_v48, %v1067_v61  ;;  %v1086_v43 = vmax.f32 %v1084_v51, %v1085_v19  ;;  %v1098_v45 = vmax.f32 %v1096_v57, %v1097_v63 }
 0x2ef   :  { %v1181_v0 = vmul.f32 1.442695, %v1162_v50  ;;  %v1079_v46 = vmax.f32 %v1077_v40, %v1078_v62  ;;  %v1090_v37 = vrot.slane %v1089_v38, 4  ;;  %v3222_v58 = vadd.f32 %v2388_v31, %v1001_v55 }
 0x2f0   :  { %v1179_v3 = vmul.f32 1.442695, %v1161_v39  ;;  %v1087_v4 = vrot.slane %v1086_v43, 1  ;;  %v1099_v6 = vrot.slane %v1098_v45, 2  ;;  %v3225_v5 = vadd.f32 %v3191_v35, %v943_v33  ;;  %v2391_v42 = vpop.f32.mrb[12].mxu0 }
 0x2f1   :  { %2558 = vpow2.f32 %v1181_v0  ;;  %v1080_v7 = vrot.slane %v1079_v46, 1  ;;  %v1091_v8 = vmax.f32 %v1089_v38, %v1090_v37  ;;  %v1110_v48 = vsel %vm1046_vm2, %v3222_v58, -inf  ;;  %v953_v9 = vpop.f32.mrb[13].mxu0 }
 0x2f2   :  { %2560 = vpow2.f32 %v1179_v3  ;;  %v1088_v11 = vmax.f32 %v1086_v43, %v1087_v4  ;;  %v1100_v52 = vmax.f32 %v1098_v45, %v1099_v6  ;;  %v1111_v60 = vrot.slane %v1110_v48, 4 }
 0x2f3   :  { %v1081_v16 = vmax.f32 %v1079_v46, %v1080_v7  ;;  %v1092_v54 = vrot.slane %v1091_v8, 2  ;;  %v1103_v13 = vsel %vm1046_vm2, %v3225_v5, -inf  ;;  %v3231_v35 = vadd.f32 %v2391_v42, %v1005_v10 }
 0x2f4   :  { %v1164_v12 = vsub.f32 %v3205_v14, %v1088_v11  ;;  %v1101_v15 = vrot.slane %v1100_v52, 1  ;;  %v1112_v20 = vmax.f32 %v1110_v48, %v1111_v60  ;;  %v1104_v18 = vrot.slane %v1103_v13, 4  ;;  %v3234_v23 = vpop.f32.mrb[14].mxu0 }
 0x2f5   :  { %v1163_v25 = vsub.f32 %v3207_v17, %v1081_v16  ;;  %v1093_v26 = vmax.f32 %v1091_v8, %v1092_v54  ;;  %v1124_v28 = vsel %vm1046_vm2, %v3231_v35, -inf  ;;  %v3240_v29 = vadd.f32 %v3193_v2, %v953_v9  ;;  %v3242_v30 = vpop.f32.mrb[15].mxu0 }
 0x2f6   :  { %v1185_v21 = vmul.f32 1.442695, %v1164_v12  ;;  %v1102_v44 = vmax.f32 %v1100_v52, %v1101_v15  ;;  %v1113_v47 = vrot.slane %v1112_v20, 2  ;;  %v1105_v14 = vmax.f32 %v1103_v13, %v1104_v18 }
 0x2f7   :  { %v3244_v32 = vpop.eup %2554  ;;  %v1183_v49 = vmul.f32 1.442695, %v1163_v25  ;;  %v1094_v51 = vrot.slane %v1093_v26, 1  ;;  %v1125_v53 = vrot.slane %v1124_v28, 4  ;;  %v1117_v17 = vsel %vm1046_vm2, %v3240_v29, -inf }
 0x2f8   :  { %v3248_v56 = vpop.eup %2556  ;;  %v1214_v2 = vsel %vm1046_vm2, %v3244_v32, 0.0  ;;  %2562 = vpow2.f32 %v1185_v21  ;;  %v1166_v40 = vsub.f32 %v3213_v27, %v1102_v44  ;;  %v1114_v57 = vmax.f32 %v1112_v20, %v1113_v47  ;;  %v3253_v55 = vpop.f32.mrb[16].mxu0 }
 0x2f9   :  { %v1215_v59 = vrot.slane %v1214_v2, 4  ;;  %v1207_v61 = vsel %vm1046_vm2, %v3248_v56, 0.0  ;;  %2564 = vpow2.f32 %v1183_v49  ;;  %v1095_v19 = vmax.f32 %v1093_v26, %v1094_v51  ;;  %v3257_v63 = vpop.f32.mrb[17].mxu0 }
 0x2fa   :  { %v1208_v31 = vrot.slane %v1207_v61, 4  ;;  %v1189_v50 = vmul.f32 1.442695, %v1166_v40  ;;  %v1115_v62 = vrot.slane %v1114_v57, 1  ;;  %v1106_v38 = vrot.slane %v1105_v14, 2 }
 0x2fb   :  { %v3259_v33 = vpop.eup %2558  ;;  %v1216_v39 = vadd.f32 %v1215_v59, %v1214_v2  ;;  %v1165_v27 = vsub.f32 %v3216_v34, %v1095_v19  ;;  %v1126_v43 = vmax.f32 %v1124_v28, %v1125_v53  ;;  %v1118_v45 = vrot.slane %v1117_v17, 4 }
 0x2fc   :  { %v3262_v0 = vpop.eup %2560  ;;  %v1209_v46 = vadd.f32 %v1208_v31, %v1207_v61  ;;  %v1228_v37 = vsel %vm1046_vm2, %v3259_v33, 0.0  ;;  %2566 = vpow2.f32 %v1189_v50  ;;  %v1116_v3 = vmax.f32 %v1114_v57, %v1115_v62  ;;  %v1009_v61 = vpop.permute.xlu1 %1008 }
 0x2fd   :  { %v1217_v4 = vrot.slane %v1216_v39, 2  ;;  %v1229_v6 = vrot.slane %v1228_v37, 4  ;;  %v1221_v42 = vsel %vm1046_vm2, %v3262_v0, 0.0  ;;  %v1187_v7 = vmul.f32 1.442695, %v1165_v27 }
 0x2fe   :  { %v1210_v8 = vrot.slane %v1209_v46, 2  ;;  %v1222_v48 = vrot.slane %v1221_v42, 4  ;;  %v1168_v34 = vsub.f32 %v3222_v58, %v1116_v3  ;;  %v1107_v9 = vmax.f32 %v1105_v14, %v1106_v38 }
 0x2ff   :  { %v1218_v10 = vadd.f32 %v1217_v4, %v1216_v39  ;;  %v1230_v11 = vadd.f32 %v1229_v6, %v1228_v37  ;;  %2568 = vpow2.f32 %v1187_v7  ;;  %v1127_v52 = vrot.slane %v1126_v43, 2 }
 0x300   :  { %v3269_v60 = vadd.f32 %v1210_v8, %v1209_v46  ;;  %v1223_v16 = vadd.f32 %v1222_v48, %v1221_v42  ;;  %v1193_v54 = vmul.f32 1.442695, %v1168_v34  ;;  %v1108_v13 = vrot.slane %v1107_v9, 1 }
 0x301   :  { %v1219_v12 = vrot.slane %v1218_v10, 1  ;;  %v1231_v15 = vrot.slane %v1230_v11, 2  ;;  %v1128_v20 = vmax.f32 %v1126_v43, %v1127_v52  ;;  %v1119_v28 = vmax.f32 %v1117_v17, %v1118_v45 }
 0x302   :  { %v3271_v18 = vpop.eup %2562  ;;  %v1224_v25 = vrot.slane %v1223_v16, 2  ;;  %2570 = vpow2.f32 %v1193_v54  ;;  %v1109_v26 = vmax.f32 %v1107_v9, %v1108_v13  ;;  %v1212_v14 = vrot.slane %v3269_v60, 1 }
 0x303   :  { %v3273_v58 = vpop.eup %2564  ;;  %v1220_v21 = vadd.f32 %v1219_v12, %v1218_v10  ;;  %v1242_v44 = vsel %vm1046_vm2, %v3271_v18, 0.0  ;;  %v1129_v47 = vrot.slane %v1128_v20, 1  ;;  %v3281_v2 = vadd.f32 %v1231_v15, %v1230_v11  ;;  %v1013_v12 = vpop.permute.xlu1 %1012 }
 0x304   :  { %v1243_v49 = vrot.slane %v1242_v44, 4  ;;  %v1235_v51 = vsel %vm1046_vm2, %v3273_v58, 0.0  ;;  %v1167_v53 = vsub.f32 %v3225_v5, %v1109_v26  ;;  %v3283_v40 = vadd.f32 %v1224_v25, %v1223_v16 }
 0x305   :  { %v1236_v17 = vrot.slane %v1235_v51, 4  ;;  %v1130_v57 = vmax.f32 %v1128_v20, %v1129_v47  ;;  %2572 = vrcp.f32 %v1220_v21  ;;  %v1120_v50 = vrot.slane %v1119_v28, 2 }
 0x306   :  { %v3285_v59 = vpop.eup %2566  ;;  %v1244_v19 = vadd.f32 %v1243_v49, %v1242_v44  ;;  %v1191_v31 = vmul.f32 1.442695, %v1167_v53  ;;  %v3291_v5 = vadd.f32 %v3234_v23, %v1009_v61  ;;  %v3299_v6 = vadd.f32 %v3195_v36, %v3242_v30 }
 0x307   :  { %v1237_v62 = vadd.f32 %v1236_v17, %v1235_v51  ;;  %v1256_v38 = vsel %vm1046_vm2, %v3285_v59, 0.0  ;;  %v1170_v39 = vsub.f32 %v3231_v35, %v1130_v57  ;;  %v1121_v45 = vmax.f32 %v1119_v28, %v1120_v50 }
 0x308   :  { %v1245_v27 = vrot.slane %v1244_v19, 2  ;;  %v1257_v43 = vrot.slane %v1256_v38, 4  ;;  %2574 = vpow2.f32 %v1191_v31  ;;  %v1138_v4 = vsel %vm1046_vm2, %v3291_v5, -inf }
 0x309   :  { %v3293_v46 = vpop.eup %2568  ;;  %v1238_v37 = vrot.slane %v1237_v62, 2  ;;  %v1197_v3 = vmul.f32 1.442695, %v1170_v39  ;;  %v1233_v35 = vrot.slane %v3281_v2, 1  ;;  %v1122_v7 = vrot.slane %v1121_v45, 1 }
 0x30a   :  { %v1258_v42 = vadd.f32 %v1257_v43, %v1256_v38  ;;  %v1249_v23 = vsel %vm1046_vm2, %v3293_v46, 0.0  ;;  %v3304_v8 = vadd.f32 %v1245_v27, %v1244_v19  ;;  %v1139_v34 = vrot.slane %v1138_v4, 4 }
 0x30b   :  { %v1250_v48 = vrot.slane %v1249_v23, 4  ;;  %2576 = vpow2.f32 %v1197_v3  ;;  %v3308_v10 = vadd.f32 %v1238_v37, %v1237_v62  ;;  %v1123_v52 = vmax.f32 %v1121_v45, %v1122_v7 }
 0x30c   :  { %v3306_v9 = vpop.eup %2570  ;;  %v1259_v11 = vrot.slane %v1258_v42, 2  ;;  %v1131_v36 = vsel %vm1046_vm2, %v3299_v6, -inf  ;;  %v1226_v30 = vrot.slane %v3283_v40, 1  ;;  %v1140_v13 = vmax.f32 %v1138_v4, %v1139_v34 }
 0x30d   :  { %v1251_v16 = vadd.f32 %v1250_v48, %v1249_v23  ;;  %v1270_v54 = vsel %vm1046_vm2, %v3306_v9, 0.0  ;;  %v1169_v25 = vsub.f32 %v3240_v29, %v1123_v52  ;;  %v1132_v26 = vrot.slane %v1131_v36, 4 }
 0x30e   :  { %v3315_v15 = vadd.f32 %v1259_v11, %v1258_v42  ;;  %v1271_v20 = vrot.slane %v1270_v54, 4  ;;  %v1141_v21 = vrot.slane %v1140_v13, 2  ;;  %v3319_v44 = vadd.f32 %v3253_v55, %v1013_v12 }
 0x30f   :  { %v1252_v28 = vrot.slane %v1251_v16, 2  ;;  %v3323_v47 = vadd.f32 %v3197_v41, %v3257_v63  ;;  %v3325_v49 = vpop.eup %2572  ;;  %v1247_v51 = vrot.slane %v3304_v8, 1  ;;  %v1240_v53 = vrot.slane %v3308_v10, 1 }
 0x310   :  { %v1272_v17 = vadd.f32 %v1271_v20, %v1270_v54  ;;  %v1195_v57 = vmul.f32 1.442695, %v1169_v25  ;;  %v1142_v29 = vmax.f32 %v1140_v13, %v1141_v21  ;;  %v1133_v19 = vmax.f32 %v1131_v36, %v1132_v26 }
 0x311   :  { %v1253_v61 = vadd.f32 %v1252_v28, %v1251_v16  ;;  %v1152_v31 = vsel %vm1046_vm2, %v3319_v44, -inf  ;;  %v1145_v63 = vsel %vm1046_vm2, %v3323_v47, -inf  ;;  %v1261_v62 = vrot.slane %v3315_v15, 1 }
 0x312   :  { %v3331_v55 = vpop.eup %2574  ;;  %v1273_v50 = vrot.slane %v1272_v17, 2  ;;  %2578 = vpow2.f32 %v1195_v57  ;;  %v1153_v41 = vrot.slane %v1152_v31, 4  ;;  %v1143_v39 = vrot.slane %v1142_v29, 1 }
 0x313   :  { %v1263_v38 = vsel %vm1046_vm2, %v3331_v55, 0.0  ;;  %v1134_v27 = vrot.slane %v1133_v19, 2  ;;  %v1254_v43 = vrot.slane %v1253_v61, 1  ;;  %v1146_v3 = vrot.slane %v1145_v63, 4 }
 0x314   :  { %v1264_v45 = vrot.slane %v1263_v38, 4  ;;  %v1154_v37 = vmax.f32 %v1152_v31, %v1153_v41  ;;  %v1274_v42 = vadd.f32 %v1273_v50, %v1272_v17  ;;  %v1144_v23 = vmax.f32 %v1142_v29, %v1143_v39 }
 0x315   :  { %v3338_v4 = vpop.eup %2576  ;;  %v1135_v7 = vmax.f32 %v1133_v19, %v1134_v27  ;;  %v1213_v48 = vadd.f32 %v1212_v14, %v3269_v60  ;;  %v1227_v36 = vadd.f32 %v1226_v30, %v3283_v40  ;;  %v1147_v12 = vmax.f32 %v1145_v63, %v1146_v3 }
 0x316   :  { %v1265_v34 = vadd.f32 %v1264_v45, %v1263_v38  ;;  %v1284_v11 = vsel %vm1046_vm2, %v3338_v4, 0.0  ;;  %v1155_v52 = vrot.slane %v1154_v37, 2  ;;  %v1172_v54 = vsub.f32 %v3291_v5, %v1144_v23 }
 0x317   :  { %v1285_v16 = vrot.slane %v1284_v11, 4  ;;  %v1136_v13 = vrot.slane %v1135_v7, 1  ;;  %2580 = vrcp.f32 %v1213_v48  ;;  %v1234_v26 = vadd.f32 %v1233_v35, %v3281_v2 }
 0x318   :  { %v1266_v20 = vrot.slane %v1265_v34, 2  ;;  %v1156_v25 = vmax.f32 %v1154_v37, %v1155_v52  ;;  %v1201_v14 = vmul.f32 1.442695, %v1172_v54  ;;  %v1148_v21 = vrot.slane %v1147_v12, 2 }
 0x319   :  { %v1286_v60 = vadd.f32 %v1285_v16, %v1284_v11  ;;  %v1137_v28 = vmax.f32 %v1135_v7, %v1136_v13  ;;  %2582 = vrcp.f32 %v1227_v36  ;;  %v1241_v40 = vadd.f32 %v1240_v53, %v3308_v10 }
 0x31a   :  { %v1267_v17 = vadd.f32 %v1266_v20, %v1265_v34  ;;  %v1157_v57 = vrot.slane %v1156_v25, 1  ;;  %2584 = vpow2.f32 %v1201_v14  ;;  %v1149_v29 = vmax.f32 %v1147_v12, %v1148_v21 }
 0x31b   :  { %v1287_v30 = vrot.slane %v1286_v60, 2  ;;  %v1171_v5 = vsub.f32 %v3299_v6, %v1137_v28  ;;  %2586 = vrcp.f32 %v1234_v26  ;;  %v1248_v2 = vadd.f32 %v1247_v51, %v3304_v8 }
 0x31c   :  { %v3352_v19 = vpop.eup %2578  ;;  %v1268_v31 = vrot.slane %v1267_v17, 1  ;;  %v1158_v50 = vmax.f32 %v1156_v25, %v1157_v57  ;;  %v1150_v38 = vrot.slane %v1149_v29, 1  ;;  %2588 = vrcp.f32 %v1241_v40 }
 0x31d   :  { %v1288_v35 = vadd.f32 %v1287_v30, %v1286_v60  ;;  %v1277_v41 = vsel %vm1046_vm2, %v3352_v19, 0.0  ;;  %v1199_v63 = vmul.f32 1.442695, %v1171_v5  ;;  %v1255_v53 = vadd.f32 %v1254_v43, %v1253_v61 }
 0x31e   :  { %v1278_v39 = vrot.slane %v1277_v41, 4  ;;  %v1174_v10 = vsub.f32 %v3319_v44, %v1158_v50  ;;  %v1275_v6 = vrot.slane %v1274_v42, 1  ;;  %v1151_v27 = vmax.f32 %v1149_v29, %v1150_v38 }
 0x31f   :  { %2590 = vpow2.f32 %v1199_v63  ;;  %v1262_v45 = vadd.f32 %v1261_v62, %v3315_v15  ;;  %v1269_v8 = vadd.f32 %v1268_v31, %v1267_v17  ;;  %v1289_v7 = vrot.slane %v1288_v35, 1 }
 0x320   :  { %v1279_v37 = vadd.f32 %v1278_v39, %v1277_v41  ;;  %v1205_v3 = vmul.f32 1.442695, %v1174_v10  ;;  %2592 = vrcp.f32 %v1248_v2  ;;  %v1173_v51 = vsub.f32 %v3323_v47, %v1151_v27 }
 0x321   :  { %2594 = vrcp.f32 %v1255_v53  ;;  %v2581_v23 = vpop.eup %2580  ;;  %v1276_v61 = vadd.f32 %v1275_v6, %v1274_v42  ;;  %v1322_v15 = vmul.f32 %v3325_v49, %v3244_v32  ;;  %v1290_v32 = vadd.f32 %v1289_v7, %v1288_v35 }
 0x322   :  { %v1280_v48 = vrot.slane %v1279_v37, 2  ;;  %2596 = vpow2.f32 %v1205_v3  ;;  %v1203_v34 = vmul.f32 1.442695, %v1173_v51  ;;  %v1320_v44 = vmul.f32 %v2581_v23, %v3248_v56 }
 0x323   :  { %2598 = vrcp.f32 %v1262_v45  ;;  %v2583_v43 = vpop.eup %2582 }
 0x324   :  { %v1281_v62 = vadd.f32 %v1280_v48, %v1279_v37  ;;  %2600 = vrcp.f32 %v1269_v8  ;;  %v3363_v11 = vpop.eup %2584  ;;  %2400 = vmatprep.mubr.msk.f32.mxu1 %vm1046_vm2, %v1320_v44  ;;  %v1324_v47 = vmul.f32 %v2583_v43, %v3262_v0 }
 0x325   :  { %2602 = vpow2.f32 %v1203_v34  ;;  %v2587_v52 = vpop.eup %2586  ;;  %v1298_v56 = vsel %vm1046_vm2, %v3363_v11, 0.0  ;;  %2401 = vmatmul.mubr.msk.f32.vlgmr.msra.gmra.mrb[16].mxu1 %vm1046_vm2, %v1322_v15 }
 0x326   :  { %v1282_v36 = vrot.slane %v1281_v62, 1  ;;  %v1299_v42 = vrot.slane %v1298_v56, 4  ;;  %2403 = vmatprep.mubr.msk.f32.mxu1 %vm1046_vm2, %v1324_v47  ;;  %2604 = vrcp.f32 %v1276_v61  ;;  %v2589_v49 = vpop.eup %2588  ;;  %v1326_v16 = vmul.f32 %v2587_v52, %v3259_v33  ;;  %v1584_v52 = vpop.permute.xlu1 %1583 }
 0x327   :  { %v1328_v0 = vmul.f32 %v2589_v49, %v3273_v58 }
 0x328   :  { %v1283_v54 = vadd.f32 %v1282_v36, %v1281_v62  ;;  %v1300_v12 = vadd.f32 %v1299_v42, %v1298_v56 }
 0x329   :  { %v2591_v13 = vpop.eup %2590  ;;  %2404 = vmatmul.mubr.msk.f32.gmra.mrb[18].mxu1 %vm1046_vm2, %v1326_v16 }
 0x32a   :  { %v2593_v20 = vpop.eup %2592  ;;  %v1291_v25 = vsel %vm1046_vm2, %v2591_v13, 0.0  ;;  %2606 = vrcp.f32 %v1283_v54  ;;  %v1301_v60 = vrot.slane %v1300_v12, 2  ;;  %2406 = vmatprep.mubr.msk.f32.mxu1 %vm1046_vm2, %v1328_v0  ;;  %v1588_v36 = vpop.permute.xlu1 %1587 }
 0x32b   :  { %v2595_v26 = vpop.eup %2594  ;;  %v1292_v14 = vrot.slane %v1291_v25, 4  ;;  %2608 = vrcp.f32 %v1290_v32  ;;  %v1330_v33 = vmul.f32 %v2593_v20, %v3271_v18  ;;  %v1586_v32 = vpop.permute.xlu0 %1585 }
 0x32c   :  { %v2597_v28 = vpop.eup %2596  ;;  %v1332_v21 = vmul.f32 %v2595_v26, %v3293_v46  ;;  %v1302_v57 = vadd.f32 %v1301_v60, %v1300_v12 }
 0x32d   :  { %v2599_v17 = vpop.eup %2598  ;;  %v1293_v58 = vadd.f32 %v1292_v14, %v1291_v25  ;;  %v1312_v40 = vsel %vm1046_vm2, %v2597_v28, 0.0  ;;  %2407 = vmatmul.mubr.msk.f32.gmra.mrb[20].mxu1 %vm1046_vm2, %v1330_v33 }
 0x32e   :  { %v2601_v30 = vpop.eup %2600  ;;  %v1313_v5 = vrot.slane %v1312_v40, 4  ;;  %v1303_v31 = vrot.slane %v1302_v57, 1  ;;  %2409 = vmatprep.mubr.msk.f32.mxu1 %vm1046_vm2, %v1332_v21  ;;  %v1334_v46 = vmul.f32 %v2599_v17, %v3285_v59  ;;  %v3397_v56 = vpop.permute.xlu1 %1601 }
 0x32f   :  { %v2603_v29 = vpop.eup %2602  ;;  %v1294_v50 = vrot.slane %v1293_v58, 2  ;;  %v1336_v2 = vmul.f32 %v2601_v30, %v3331_v55  ;;  %v3403_v49 = vpop.permute.xlu0 %1599 }
 0x330   :  { %v1314_v35 = vadd.f32 %v1313_v5, %v1312_v40  ;;  %v1305_v18 = vsel %vm1046_vm2, %v2603_v29, 0.0  ;;  %v2605_v41 = vpop.eup %2604  ;;  %v1304_v10 = vadd.f32 %v1303_v31, %v1302_v57 }
 0x331   :  { %v1295_v63 = vadd.f32 %v1294_v50, %v1293_v58  ;;  %v1306_v38 = vrot.slane %v1305_v18, 4  ;;  %2410 = vmatmul.mubr.msk.f32.gmra.mrb[22].mxu1 %vm1046_vm2, %v1334_v46  ;;  %v1338_v55 = vmul.f32 %v2605_v41, %v3306_v9 }
 0x332   :  { %v1315_v39 = vrot.slane %v1314_v35, 2  ;;  %2412 = vmatprep.mubr.msk.f32.mxu1 %vm1046_vm2, %v1336_v2  ;;  %2610 = vrcp.f32 %v1304_v10  ;;  %v3399_v42 = vpop.permute.xlu1 %1603 }
 0x333   :  { %v1296_v53 = vrot.slane %v1295_v63, 1  ;;  %v1307_v6 = vadd.f32 %v1306_v38, %v1305_v18  ;;  %v1590_v54 = vpop.permute.xlu0 %1589 }
 0x334   :  { %v2607_v27 = vpop.eup %2606  ;;  %v1316_v45 = vadd.f32 %v1315_v39, %v1314_v35 }
 0x335   :  { %v2609_v37 = vpop.eup %2608  ;;  %v1308_v3 = vrot.slane %v1307_v6, 2  ;;  %v1340_v8 = vmul.f32 %v2607_v27, %v3352_v19  ;;  %v1297_v59 = vadd.f32 %v1296_v53, %v1295_v63  ;;  %2413 = vmatmul.mubr.msk.f32.gmra.mrb[24].mxu1 %vm1046_vm2, %v1338_v55 }
 0x336   :  { %v1317_v51 = vrot.slane %v1316_v45, 1  ;;  %v1342_v7 = vmul.f32 %v2609_v37, %v3338_v4 }
 0x337   :  { %v1309_v23 = vadd.f32 %v1308_v3, %v1307_v6  ;;  %2415 = vmatprep.mubr.msk.f32.mxu1 %vm1046_vm2, %v1340_v8  ;;  %2612 = vrcp.f32 %v1297_v59  ;;  %v1592_v12 = vpop.permute.xlu0 %1591 }
 0x338   :  { %v1318_v48 = vadd.f32 %v1317_v51, %v1316_v45 }
 0x339   :  { %v1310_v34 = vrot.slane %v1309_v23, 1  ;;  %2416 = vmatmul.mubr.msk.f32.gmra.mrb[26].mxu1 %vm1046_vm2, %v1342_v7 }
 0x33a   :  { %2614 = vrcp.f32 %v1318_v48 }
 0x33b   :  { %v1311_v9 = vadd.f32 %v1310_v34, %v1309_v23  ;;  %v1594_v20 = vpop.permute.xlu0 %1593 }
 0x33c   :  { %v2611_v44 = vpop.eup %2610 }
 0x33d   :  { %2616 = vrcp.f32 %v1311_v9  ;;  %v1346_v43 = vmul.f32 %v2611_v44, %v3363_v11  ;;  %v3401_v11 = vpop.permute.xlu1 %1605 }
 0x33f   :  { %v1596_v14 = vpop.permute.xlu0 %1595 }
 0x341   :  { %v2613_v19 = vpop.eup %2612  ;;  %v3405_v16 = vpop.permute.xlu1 %1607 }
 0x342   :  { %v1344_v61 = vmul.f32 %v2613_v19, %v2591_v13 }
 0x343   :  { %v1598_v33 = vpop.permute.xlu0 %1597 }
 0x344   :  { %2418 = vmatprep.mubr.msk.f32.mxu1 %vm1046_vm2, %v1344_v61  ;;  %v2615_v15 = vpop.eup %2614 }
 0x345   :  { %2419 = vmatmul.mubr.msk.f32.gmra.mrb[28].mxu1 %vm1046_vm2, %v1346_v43  ;;  %v1350_v4 = vmul.f32 %v2615_v15, %v2597_v28  ;;  %v3407_v13 = vpop.permute.xlu1 %1609 }
 0x347   :  { %v2617_v62 = vpop.eup %2616  ;;  %v3411_v21 = vpop.permute.xlu0 %1613 }
 0x348   :  { %v1348_v47 = vmul.f32 %v2617_v62, %v2603_v29 }
 0x349   :  { %v3409_v0 = vpop.permute.xlu1 %1611 }
 0x34a   :  { %2421 = vmatprep.mubr.msk.f32.mxu1 %vm1046_vm2, %v1348_v47 }
 0x34b   :  { %2422 = vmatmul.mubr.msk.f32.gmra.mrb[30].mxu1 %vm1046_vm2, %v1350_v4  ;;  %v2551_v17 = vpop.permute.xlu0 %2550 }
 0x34c   :  { %v2553_v57 = vunpack.i.h.bf16 %v2551_v17  ;;  %v2552_v58 = vunpack.i.l.bf16 %v2551_v17 }
 0x34d   :  { %v2546_v25 = vpop.permute.xlu1 %2545 }
 0x34e   :  { %v2548_v26 = vunpack.i.h.bf16 %v2546_v25  ;;  %v2547_v60 = vunpack.i.l.bf16 %v2546_v25  ;;  %v2493_v40 = vpack.c.bf16 %v2553_v57, %v2552_v58 }
 0x350   :  { %v2489_v28 = vpack.c.bf16 %v2548_v26, %v2547_v60 }
 0x352   :  { %2490 = vmatprep.subr.bf16.mxu0 %v2489_v28 }
 0x353   :  { %2492 = vmatpush3.bf16.msra.mxu0 %v2489_v28 }
 0x354   :  { %2494 = vmatprep.subr.bf16.mxu0 %v2493_v40 }
 0x357   :  { %2496 = vmatpush3.bf16.msra.mxu0 %v2493_v40 }
 0x358   :  { %2498 = vmatprep.subr.bf16.mxu0 %v2819_v22 }
 0x3f8   :  { %v2402_v30 = vpop.f32.mrb[16].mxu1 }
 0x3f9   :  { %v1632_v5 = vmul.f32 %v2402_v30, %v1586_v32  ;;  %v1472_v29 = vpop.f32.mrb[17].mxu1 }
 0x3fa   :  { %v1631_v31 = vmul.f32 %v1584_v52, %v1472_v29 }
 0x3fb   :  { %v1654_v50 = vsel %vm70_vm0, %v1632_v5, 0.0 }
 0x3fc   :  { %v1655_v2 = vrot.slane %v1654_v50, 4  ;;  %v1647_v35 = vsel %vm70_vm0, %v1631_v31, 0.0  ;;  %v2405_v18 = vpop.f32.mrb[18].mxu1 }
 0x3fd   :  { %v1648_v46 = vrot.slane %v1647_v35, 4  ;;  %v1634_v41 = vmul.f32 %v2405_v18, %v1590_v54  ;;  %v1482_v63 = vpop.f32.mrb[19].mxu1 }
 0x3fe   :  { %v1656_v38 = vadd.f32 %v1655_v2, %v1654_v50  ;;  %v1633_v39 = vmul.f32 %v1588_v36, %v1482_v63 }
 0x3ff   :  { %v1649_v10 = vadd.f32 %v1648_v46, %v1647_v35  ;;  %v1668_v53 = vsel %vm70_vm0, %v1634_v41, 0.0 }
 0x400   :  { %v1657_v6 = vrot.slane %v1656_v38, 2  ;;  %v1669_v27 = vrot.slane %v1668_v53, 4  ;;  %v1661_v45 = vsel %vm70_vm0, %v1633_v39, 0.0  ;;  %v2408_v55 = vpop.f32.mrb[20].mxu1 }
 0x401   :  { %v1650_v37 = vrot.slane %v1649_v10, 2  ;;  %v1662_v3 = vrot.slane %v1661_v45, 4  ;;  %v1636_v8 = vmul.f32 %v2408_v55, %v1594_v20  ;;  %v1492_v59 = vpop.f32.mrb[21].mxu1 }
 0x402   :  { %v1658_v51 = vadd.f32 %v1657_v6, %v1656_v38  ;;  %v1670_v23 = vadd.f32 %v1669_v27, %v1668_v53  ;;  %v1635_v7 = vmul.f32 %v1592_v12, %v1492_v59 }
 0x403   :  { %v1651_v48 = vadd.f32 %v1650_v37, %v1649_v10  ;;  %v1663_v34 = vadd.f32 %v1662_v3, %v1661_v45  ;;  %v1682_v9 = vsel %vm70_vm0, %v1636_v8, 0.0 }
 0x404   :  { %v1659_v44 = vrot.slane %v1658_v51, 1  ;;  %v1671_v19 = vrot.slane %v1670_v23, 2  ;;  %v1683_v61 = vrot.slane %v1682_v9, 4  ;;  %v1675_v43 = vsel %vm70_vm0, %v1635_v7, 0.0  ;;  %v2411_v15 = vpop.f32.mrb[22].mxu1 }
 0x405   :  { %v1652_v62 = vrot.slane %v1651_v48, 1  ;;  %v1664_v47 = vrot.slane %v1663_v34, 2  ;;  %v1676_v4 = vrot.slane %v1675_v43, 4  ;;  %v1638_v52 = vmul.f32 %v2411_v15, %v1598_v33  ;;  %v1502_v36 = vpop.f32.mrb[23].mxu1 }
 0x406   :  { %v1660_v32 = vadd.f32 %v1659_v44, %v1658_v51  ;;  %v1672_v54 = vadd.f32 %v1671_v19, %v1670_v23  ;;  %v1684_v12 = vadd.f32 %v1683_v61, %v1682_v9  ;;  %v1637_v20 = vmul.f32 %v1596_v14, %v1502_v36 }
 0x407   :  { %v1653_v25 = vadd.f32 %v1652_v62, %v1651_v48  ;;  %v1665_v26 = vadd.f32 %v1664_v47, %v1663_v34  ;;  %v1677_v60 = vadd.f32 %v1676_v4, %v1675_v43  ;;  %v1696_v28 = vsel %vm70_vm0, %v1638_v52, 0.0 }
 0x408   :  { %v1673_v17 = vrot.slane %v1672_v54, 1  ;;  %v1685_v57 = vrot.slane %v1684_v12, 2  ;;  %v1697_v58 = vrot.slane %v1696_v28, 4  ;;  %v1689_v40 = vsel %vm70_vm0, %v1637_v20, 0.0  ;;  %v2414_v30 = vpop.f32.mrb[24].mxu1 }
 0x409   :  { %v1784_v33 = vsel %vm1783_vm3, %v1660_v32, %v1653_v25  ;;  %v1666_v5 = vrot.slane %v1665_v26, 1  ;;  %v1678_v29 = vrot.slane %v1677_v60, 2  ;;  %v1690_v31 = vrot.slane %v1689_v40, 4  ;;  %v1512_v50 = vpop.f32.mrb[25].mxu1 }
 0x40a   :  { %v1686_v2 = vadd.f32 %v1685_v57, %v1684_v12  ;;  %v1698_v14 = vadd.f32 %v1697_v58, %v1696_v28  ;;  %v1640_v35 = vmul.f32 %v2414_v30, %v3397_v56  ;;  %v1639_v63 = vmul.f32 %v3403_v49, %v1512_v50 }
 0x40b   :  { %v1667_v18 = vadd.f32 %v1666_v5, %v1665_v26  ;;  %v1679_v46 = vadd.f32 %v1678_v29, %v1677_v60  ;;  %v1691_v41 = vadd.f32 %v1690_v31, %v1689_v40  ;;  %v1674_v38 = vadd.f32 %v1673_v17, %v1672_v54 }
 0x40c   :  { %v1699_v39 = vrot.slane %v1698_v14, 2  ;;  %v1710_v10 = vsel %vm70_vm0, %v1640_v35, 0.0  ;;  %v2417_v53 = vpop.f32.mrb[26].mxu1  ;;  %v1687_v3 = vrot.slane %v1686_v2, 1  ;;  %v1703_v8 = vsel %vm70_vm0, %v1639_v63, 0.0 }
 0x40d   :  { %v1786_v6 = vsel %vm1785_vm4, %v1667_v18, %v1784_v33  ;;  %v1680_v27 = vrot.slane %v1679_v46, 1  ;;  %v1692_v45 = vrot.slane %v1691_v41, 2  ;;  %v1711_v55 = vrot.slane %v1710_v10, 4  ;;  %v1522_v37 = vpop.f32.mrb[27].mxu1 }
 0x40e   :  { %v1700_v56 = vadd.f32 %v1699_v39, %v1698_v14  ;;  %v1642_v59 = vmul.f32 %v2417_v53, %v3401_v11  ;;  %v1704_v7 = vrot.slane %v1703_v8, 4  ;;  %v1641_v9 = vmul.f32 %v3399_v42, %v1522_v37 }
 0x40f   :  { %v1681_v51 = vadd.f32 %v1680_v27, %v1679_v46  ;;  %v1693_v49 = vadd.f32 %v1692_v45, %v1691_v41  ;;  %v1712_v23 = vadd.f32 %v1711_v55, %v1710_v10  ;;  %v1788_v44 = vsel %vm1787_vm5, %v1674_v38, %v1786_v6 }
 0x410   :  { %v1701_v48 = vrot.slane %v1700_v56, 1  ;;  %v1724_v34 = vsel %vm70_vm0, %v1642_v59, 0.0  ;;  %v1705_v43 = vadd.f32 %v1704_v7, %v1703_v8  ;;  %v1688_v62 = vadd.f32 %v1687_v3, %v1686_v2 }
 0x411   :  { %v1694_v19 = vrot.slane %v1693_v49, 1  ;;  %v1713_v61 = vrot.slane %v1712_v23, 2  ;;  %v1725_v15 = vrot.slane %v1724_v34, 4  ;;  %v1717_v47 = vsel %vm70_vm0, %v1641_v9, 0.0 }
 0x412   :  { %v1790_v11 = vsel %vm1789_vm6, %v1681_v51, %v1788_v44  ;;  %v1706_v36 = vrot.slane %v1705_v43, 2  ;;  %v1702_v54 = vadd.f32 %v1701_v48, %v1700_v56  ;;  %v1718_v12 = vrot.slane %v1717_v47, 4 }
 0x413   :  { %v1695_v4 = vadd.f32 %v1694_v19, %v1693_v49  ;;  %v1714_v52 = vadd.f32 %v1713_v61, %v1712_v23  ;;  %v1726_v32 = vadd.f32 %v1725_v15, %v1724_v34  ;;  %v1792_v42 = vsel %vm1791_vm7, %v1688_v62, %v1790_v11 }
 0x414   :  { %v1707_v25 = vadd.f32 %v1706_v36, %v1705_v43  ;;  %v1719_v28 = vadd.f32 %v1718_v12, %v1717_v47  ;;  %v1765_v12 = vsub.s32 1, %v2980_v1 }
 0x415   :  { %v1715_v20 = vrot.slane %v1714_v52, 1  ;;  %v1727_v26 = vrot.slane %v1726_v32, 2  ;;  %v1794_v60 = vsel %vm1793_vm8, %v1695_v4, %v1792_v42  ;;  %v3461_v42 = vld [vmem:[%s3506_s3] sm:$0xff]  ;;  %s2735_s3 = smov [#allocation8]  }
 0x416   :  { %v1796_v17 = vsel %vm1795_vm9, %v1702_v54, %v1794_v60  ;;  %v1708_v58 = vrot.slane %v1707_v25, 1  ;;  %v1720_v33 = vrot.slane %v1719_v28, 2  ;;  %s2168_s10 = sshll.u32 %s2735_s3, 4  ;;  %s2169_s10 = int_to_ptr.vmem [resolvable:$true] %s2168_s10 }
 0x417   :  { %v1716_v57 = vadd.f32 %v1715_v20, %v1714_v52  ;;  %v1728_v40 = vadd.f32 %v1727_v26, %v1726_v32  ;;  %2432 = vmatprep.mubr.msk.f32.mxu0 %vm70_vm0, %v1796_v17  ;;  %v1766_v20 = vrot.slane %v3461_v42, %v1765_v12  ;;  %v2627_v17 = vld [vmem:[#allocation2 + $0x8] sm:$0xff]  ;;  %s2695_s11 = scalar_lea.vmem %s2169_s10, 256  ;;  %p2700_p11 = scmp.lt.s32.totalorder %s2169_s10, %s2169_s10 }
 0x418   :  { %v2420_v30 = vpop.f32.mrb[28].mxu1  ;;  %v1709_v31 = vadd.f32 %v1708_v58, %v1707_v25  ;;  %v1721_v2 = vadd.f32 %v1720_v33, %v1719_v28  ;;  %p2696_p10 = scmp.ne.s32.totalorder %s2169_s10, %s2695_s11  ;;  %p2701_p12 = scmp.lt.s32.totalorder %s2695_s11, %s2695_s11 }
 0x419   :  { %v1644_v5 = vmul.f32 %v2420_v30, %v3407_v13  ;;  %v1532_v29 = vpop.f32.mrb[29].mxu1  ;;  %v1729_v18 = vrot.slane %v1728_v40, 1 }
 0x41a   :  { %v1643_v50 = vmul.f32 %v3405_v16, %v1532_v29  ;;  %v1797_v35 = vsel %vm1783_vm3, %v1716_v57, %v1709_v31  ;;  %v1722_v63 = vrot.slane %v1721_v2, 1  ;;  %p2702_p13 = por %p2701_p12, %p2700_p11 }
 0x41b   :  { %v1738_v14 = vsel %vm70_vm0, %v1644_v5, 0.0  ;;  %v1730_v45 = vadd.f32 %v1729_v18, %v1728_v40 }
 0x41c   :  { %v1739_v46 = vrot.slane %v1738_v14, 4  ;;  %v1731_v41 = vsel %vm70_vm0, %v1643_v50, 0.0  ;;  %v1723_v53 = vadd.f32 %v1722_v63, %v1721_v2  ;;  %p2703_p0 = pnand %p2702_p13, %p2696_p10 }
 0x41d   :  { %v1732_v38 = vrot.slane %v1731_v41, 4 }
 0x41e   :  { %v1740_v39 = vadd.f32 %v1739_v46, %v1738_v14  ;;  %v2423_v10 = vpop.f32.mrb[30].mxu1  ;;  %v1798_v37 = vsel %vm1785_vm4, %v1723_v53, %v1797_v35  ;;  %v2027_v46 = vld [vmem:[#allocation7 + $0x40] sm:$0xff] }
 0x41f   :  { %v1733_v6 = vadd.f32 %v1732_v38, %v1731_v41  ;;  %v1646_v13 = vmul.f32 %v2423_v10, %v3411_v21  ;;  %v1542_v27 = vpop.f32.mrb[31].mxu1  ;;  %v1799_v59 = vsel %vm1787_vm5, %v1730_v45, %v1798_v37  ;;  %v2028_v41 = vld [vmem:[#allocation7 + $0x50] sm:$0xff]  ;;  %v1936_v45 = vsub.s32 5, %v2980_v1 }
 0x420   :  { %v1741_v16 = vrot.slane %v1740_v39, 2  ;;  %v1645_v55 = vmul.f32 %v3409_v0, %v1542_v27  ;;  %v2505_v63 = vpack.c.bf16 %v2028_v41, %v2027_v46  ;;  %v1930_v27 = vsub.s32 4, %v2980_v1 }
 0x421   :  { %v1734_v3 = vrot.slane %v1733_v6, 2  ;;  %v1752_v56 = vsel %vm70_vm0, %v1646_v13, 0.0 }
 0x422   :  { %v1742_v8 = vadd.f32 %v1741_v16, %v1740_v39  ;;  %v1753_v51 = vrot.slane %v1752_v56, 4  ;;  %v1745_v49 = vsel %vm70_vm0, %v1645_v55, 0.0  ;;  %v1931_v16 = vrot.slane %v3461_v42, %v1930_v27 }
 0x423   :  { %v1735_v23 = vadd.f32 %v1734_v3, %v1733_v6  ;;  %v1746_v7 = vrot.slane %v1745_v49, 4 }
 0x424   :  { %v1743_v48 = vrot.slane %v1742_v8, 1  ;;  %v1754_v21 = vadd.f32 %v1753_v51, %v1752_v56 }
 0x425   :  { %v1736_v34 = vrot.slane %v1735_v23, 1  ;;  %v1747_v9 = vadd.f32 %v1746_v7, %v1745_v49  ;;  %v2029_v49 = vld [vmem:[#allocation7 + $0x60] sm:$0xff] }
 0x426   :  { %v1755_v44 = vrot.slane %v1754_v21, 2  ;;  %v1744_v61 = vadd.f32 %v1743_v48, %v1742_v8  ;;  %v1937_v8 = vrot.slane %v3461_v42, %v1936_v45 }
 0x427   :  { %v1737_v19 = vadd.f32 %v1736_v34, %v1735_v23  ;;  %v1748_v0 = vrot.slane %v1747_v9, 2  ;;  %v2030_v23 = vld [vmem:[#allocation7 + $0x70] sm:$0xff]  ;;  %v2031_v34 = vld [vmem:[#allocation7 + $0x80] sm:$0xff] }
 0x428   :  { %v1756_v43 = vadd.f32 %v1755_v44, %v1754_v21  ;;  %v2509_v21 = vpack.c.bf16 %v2030_v23, %v2029_v49 }
 0x429   :  { %v1800_v15 = vsel %vm1789_vm6, %v1737_v19, %v1799_v59  ;;  %v1749_v62 = vadd.f32 %v1748_v0, %v1747_v9  ;;  %v2032_v9 = vld [vmem:[#allocation7 + $0x90] sm:$0xff]  ;;  %v2033_v19 = vld [vmem:[#allocation7 + $0xa0] sm:$0xff] }
 0x42a   :  { %v1757_v47 = vrot.slane %v1756_v43, 1  ;;  %v1801_v11 = vsel %vm1791_vm7, %v1744_v61, %v1800_v15  ;;  %v2513_v44 = vpack.c.bf16 %v2032_v9, %v2031_v34  ;;  %v2034_v0 = vld [vmem:[#allocation7 + $0xb0] sm:$0xff] }
 0x42b   :  { %v1750_v4 = vrot.slane %v1749_v62, 1  ;;  %v2517_v61 = vpack.c.bf16 %v2034_v0, %v2033_v19 }
 0x42c   :  { %v1758_v36 = vadd.f32 %v1757_v47, %v1756_v43  ;;  %v1942_v43 = vsub.s32 2, %v2980_v1 }
 0x42d   :  { %v1751_v52 = vadd.f32 %v1750_v4, %v1749_v62 }
 0x42e   :  { %v1943_v15 = vrot.slane %v3461_v42, %v1942_v43 }
 0x42f   :  { %v1802_v32 = vsel %vm1793_vm8, %v1751_v52, %v1801_v11 }
 0x430   :  { %v1803_v54 = vsel %vm1795_vm9, %v1758_v36, %v1802_v32  ;;  %v2037_v32 = vsub.s32 3, %v2980_v1 }
 0x431   :  { %2433 = vmatmul.mubr.msk.f32.vlgmr.msra.gmra.mrb[18].mxu0 %vm70_vm0, %v1803_v54 }
 0x432   :  { %2500 = vmatpush3.bf16.msra.mxu0 %v2819_v22  ;;  %v2628_v22 = vld [vmem:[#allocation2] sm:$0xff]  ;;  %v2038_v54 = vrot.slane %v3461_v42, %v2037_v32 }
 0x433   :  { %2502 = vmatprep.subr.bf16.mxu0 %v2821_v24 }
 0x436   :  { %2504 = vmatpush3.bf16.msra.mxu0 %v2821_v24 }
 0x437   :  { %2506 = vmatprep.subr.bf16.mxu0 %v2505_v63 }
 0x504   :  { %v2434_v25 = vpop.f32.mrb[18].mxu0 }
 0x505   :  { %v1896_v26 = vadd.f32 %v2434_v25, %v1766_v20  ;;  %v1890_v60 = vpop.f32.mrb[19].mxu0 }
 0x506   :  { %v1891_v28 = vadd.f32 %v1890_v60, %v1766_v20 }
 0x507   :  { %v1900_v57 = vadd.f32 %v2627_v17, %v1896_v26 }
 0x508   :  { %v1899_v58 = vadd.f32 %v2628_v22, %v1891_v28 }
 0x509   :  { %v1904_v40 = vsel %vm70_vm0, %v1900_v57, 0.0 }
 0x50a   :  { %1905 = vadd.xlane.f32.xlu0 %v1904_v40  ;;  %v1901_v24 = vsel %vm70_vm0, %v1899_v58, 0.0 }
 0x50b   :  { %1902 = vadd.xlane.f32.xlu1 %v1901_v24 }
 0x597   :  { %v1906_v30 = vpop.xlane.xlu0 %1905 }
 0x598   :  { %v1909_v33 = vmul.f32 0.03125, %v1906_v30  ;;  %v1903_v5 = vpop.xlane.xlu1 %1902 }
 0x599   :  { %v1908_v29 = vmul.f32 0.03125, %v1903_v5 }
 0x59a   :  { %v1911_v31 = vsub.f32 %v1900_v57, %v1909_v33 }
 0x59b   :  { %v1910_v50 = vsub.f32 %v1899_v58, %v1908_v29 }
 0x59c   :  { %v1913_v2 = vmul.f32 %v1911_v31, %v1911_v31 }
 0x59d   :  { %v1912_v14 = vmul.f32 %v1910_v50, %v1910_v50 }
 0x59e   :  { %v1917_v35 = vsel %vm70_vm0, %v1913_v2, 0.0 }
 0x59f   :  { %1918 = vadd.xlane.f32.xlu1 %v1917_v35  ;;  %v1914_v18 = vsel %vm70_vm0, %v1912_v14, 0.0 }
 0x5a0   :  { %1915 = vadd.xlane.f32.xlu0 %v1914_v18 }
 0x62c   :  { %v1919_v38 = vpop.xlane.xlu1 %1918 }
 0x62d   :  { %v1921_v39 = vmul.f32 0.03125, %v1919_v38  ;;  %v1916_v10 = vpop.xlane.xlu0 %1915  ;;  %v2157_v38 = vsub.s32 7, %v2980_v1 }
 0x62e   :  { %v1920_v53 = vmul.f32 0.03125, %v1916_v10 }
 0x62f   :  { %v1923_v6 = vadd.f32 1e-05, %v1921_v39 }
 0x630   :  { %v1922_v13 = vadd.f32 1e-05, %v1920_v53 }
 0x631   :  { %2618 = vrsqrt.f32 %v1923_v6 }
 0x632   :  { %2620 = vrsqrt.f32 %v1922_v13  ;;  %v2158_v13 = vrot.slane %v3461_v42, %v2157_v38 }
 0x63b   :  { %v2619_v55 = vpop.eup %2618 }
 0x63c   :  { %v2621_v37 = vpop.eup %2620  ;;  %v1927_v3 = vmul.f32 %v2619_v55, %v1911_v31 }
 0x63d   :  { %v1926_v56 = vmul.f32 %v2621_v37, %v1910_v50 }
 0x63e   :  { %v1933_v59 = vmul.f32 %v1931_v16, %v1927_v3 }
 0x63f   :  { %v1932_v51 = vmul.f32 %v1931_v16, %v1926_v56 }
 0x640   :  { %v1939_v48 = vadd.f32 %v1937_v8, %v1933_v59 }
 0x641   :  { %v1938_v7 = vadd.f32 %v1937_v8, %v1932_v51 }
 0x643   :  { %2443 = vmatprep.mubr.msk.f32.mxu0 %vm70_vm0, %v1938_v7 }
 0x644   :  { %2444 = vmatmul.mubr.msk.f32.vlgmr.msra.gmra.mrb[20].mxu0 %vm70_vm0, %v1939_v48 }
 0x645   :  { %2508 = vmatpush3.bf16.msra.mxu0 %v2505_v63  ;;  %v2151_v63 = vsub.s32 6, %v2980_v1 }
 0x646   :  { %2510 = vmatprep.subr.bf16.mxu0 %v2509_v21 }
 0x647   :  { %v2152_v39 = vrot.slane %v3461_v42, %v2151_v63 }
 0x649   :  { %2512 = vmatpush3.bf16.msra.mxu0 %v2509_v21 }
 0x64a   :  { %2514 = vmatprep.subr.bf16.mxu0 %v2513_v44 }
 0x64d   :  { %2516 = vmatpush3.bf16.msra.mxu0 %v2513_v44 }
 0x64e   :  { %2518 = vmatprep.subr.bf16.mxu0 %v2517_v61 }
 0x651   :  { %2520 = vmatpush3.bf16.msra.mxu0 %v2517_v61 }
 0x717   :  { %v2445_v62 = vpop.f32.mrb[20].mxu0 }
 0x718   :  { %v2022_v47 = vadd.f32 %v2445_v62, %v1943_v15  ;;  %v2016_v11 = vpop.f32.mrb[21].mxu0 }
 0x719   :  { %v2017_v4 = vadd.f32 %v2016_v11, %v1943_v15 }
 0x71a   :  { %v2026_v36 = vmax.f32 %v2022_v47, 0.0 }
 0x71b   :  { %v2025_v52 = vmax.f32 %v2017_v4, 0.0 }
 0x71d   :  { %2462 = vmatprep.mubr.msk.f32.mxu0 %vm2039_vm10, %v2025_v52 }
 0x71e   :  { %2463 = vmatmul.mubr.msk.f32.vlgmr.msra.gmra.mrb[22].mxu0 %vm2039_vm10, %v2026_v36 }
 0x7f1   :  { %v2464_v12 = vpop.f32.mrb[22].mxu0 }
 0x7f2   :  { %v2118_v20 = vadd.f32 %v2464_v12, %v2038_v54  ;;  %v2112_v25 = vpop.f32.mrb[23].mxu0 }
 0x7f3   :  { %v2113_v26 = vadd.f32 %v2112_v25, %v2038_v54 }
 0x7f4   :  { %v2122_v60 = vadd.f32 %v2118_v20, %v1939_v48 }
 0x7f5   :  { %v2121_v28 = vadd.f32 %v2113_v26, %v1938_v7 }
 0x7f6   :  { %v2126_v17 = vsel %vm70_vm0, %v2122_v60, 0.0 }
 0x7f7   :  { %2127 = vadd.xlane.f32.xlu1 %v2126_v17  ;;  %v2123_v57 = vsel %vm70_vm0, %v2121_v28, 0.0 }
 0x7f8   :  { %2124 = vadd.xlane.f32.xlu0 %v2123_v57 }
 0x884   :  { %v2128_v22 = vpop.xlane.xlu1 %2127 }
 0x885   :  { %v2130_v58 = vmul.f32 0.03125, %v2128_v22  ;;  %v2125_v40 = vpop.xlane.xlu0 %2124 }
 0x886   :  { %v2129_v24 = vmul.f32 0.03125, %v2125_v40 }
 0x887   :  { %v2132_v30 = vsub.f32 %v2122_v60, %v2130_v58 }
 0x888   :  { %v2131_v33 = vsub.f32 %v2121_v28, %v2129_v24 }
 0x889   :  { %v2134_v5 = vmul.f32 %v2132_v30, %v2132_v30 }
 0x88a   :  { %v2133_v29 = vmul.f32 %v2131_v33, %v2131_v33 }
 0x88b   :  { %v2138_v31 = vsel %vm70_vm0, %v2134_v5, 0.0 }
 0x88c   :  { %2139 = vadd.xlane.f32.xlu1 %v2138_v31  ;;  %v2135_v50 = vsel %vm70_vm0, %v2133_v29, 0.0 }
 0x88d   :  { %2136 = vadd.xlane.f32.xlu0 %v2135_v50 }
 0x919   :  { %v2140_v2 = vpop.xlane.xlu1 %2139 }
 0x91a   :  { %v2142_v14 = vmul.f32 0.03125, %v2140_v2  ;;  %v2137_v35 = vpop.xlane.xlu0 %2136 }
 0x91b   :  { %v2141_v18 = vmul.f32 0.03125, %v2137_v35 }
 0x91c   :  { %v2144_v46 = vadd.f32 1e-05, %v2142_v14 }
 0x91d   :  { %v2143_v41 = vadd.f32 1e-05, %v2141_v18 }
 0x91e   :  { %2622 = vrsqrt.f32 %v2144_v46 }
 0x91f   :  { %2624 = vrsqrt.f32 %v2143_v41 }
 0x928   :  { %v2623_v10 = vpop.eup %2622 }
 0x929   :  { %v2625_v53 = vpop.eup %2624  ;;  %v2148_v6 = vmul.f32 %v2623_v10, %v2132_v30 }
 0x92a   :  { %v2147_v27 = vmul.f32 %v2625_v53, %v2131_v33 }
 0x92b   :  { %v2154_v45 = vmul.f32 %v2152_v39, %v2148_v6 }
 0x92c   :  { %v2153_v16 = vmul.f32 %v2152_v39, %v2147_v27 }
 0x92d   :  { %v2160_v55 = vadd.f32 %v2158_v13, %v2154_v45 }
 0x92e   :  { %v2159_v37 = vadd.f32 %v2158_v13, %v2153_v16 }
 0x92f   :  { %2162 = vst.msk [vmem:[#allocation8 + $0x8] sm:$0xff] %vm70_vm0, %v2160_v55 }
 0x930   :  { %2161 = vst.msk [vmem:[#allocation8] sm:$0xff] %vm70_vm0, %v2159_v37 }
 0x931   :  { %2706 = shalt.err (!%p2703_p0)
}
 0x932   :  { %s2707_s13 = scalar_lea.hbm %s3507_s4, 256 }
 0x933   :  { %p2708_p1 = scmp.ne.s32.totalorder %s3507_s4, %s2707_s13  ;;  %p2711_p2 = scmp.lt.u32.totalorder %s2707_s13, %s3507_s4 }
 0x935   :  { %p2713_p3 = pnand %p2711_p2, %p2708_p1 }
 0x937   :  { %2716 = shalt.err (!%p2713_p3)
}
 0x938   :  { %2174 = dma.vmem_to_hbm [thread:$0]  %s2169_s10, 256, %s3507_s4, [#allocation4], %s2725_s27, %s2725_s27, %s2726_s28  }
 0x939   :  { %2721 = dma.done.wait [#allocation4], 256  }
 0x93a   :  { %2722 = vsyncadd [#allocation4], 4294967040 }
 0x93b   :  { %2178 = vsyncpa [#allocation3], 1 }
 0x93c   :  { %2179 = vsyncpa [#allocation6], 1 }
 0x93d   :  { %2180 = vsyncpa [#allocation4], 1 }

</bundles_post_ra>
